<compile_context>
chip_gen: v6e
topology: v6e:2x2x1
jax: 0.10.0
libtpu: 0.0.40
codegen_flags: <defaults>
</compile_context>

<pallas_src>
import functools
import math

import jax
import jax.numpy as jnp
from jax import lax
from jax.experimental import pallas as pl
from jax.experimental.pallas import tpu as pltpu


_LANE = 128      # lane width  (last dim)
_SUBLANE = 8     # sublane count (second-to-last dim)


def _round_up(n: int, m: int) -> int:
    return ((n + m - 1) // m) * m


# ----------------------------- Pallas kernel -------------------------------

def _make_fused_generator_kernel(num_layers: int, rows_real: int,
                                 cols_real: int):
    """Fused [Linear+ReLU] * num_layers + global min/max rescale to [0, 255].

    Kernel refs: (x, w0, b0, w1, b1, ..., w_{L-1}, b_{L-1}, out), all padded
    to (8, 128)-aligned shapes and fully VMEM-resident (no grid).
    """

    def kernel(*refs):
        x_ref = refs[0]
        o_ref = refs[1 + 2 * num_layers]

        h = x_ref[...]
        # Fully unrolled layer chain; activations stay on-chip as values.
        for l in range(num_layers):
            w = refs[1 + 2 * l][...]
            b = refs[2 + 2 * l][...]
            h = jnp.dot(h, w, preferred_element_type=jnp.float32) + b
            h = jnp.maximum(h, 0.0)          # ReLU (incl. after last layer)

        # Epilogue: scale_tensor_to_0_1(h) * 255 with a GLOBAL min/max taken
        # over the real (unpadded) rows/cols only.
        rows = lax.broadcasted_iota(jnp.int32, h.shape, 0)
        cols = lax.broadcasted_iota(jnp.int32, h.shape, 1)
        valid = (rows < rows_real) & (cols < cols_real)
        mn = jnp.min(jnp.where(valid, h, jnp.inf))
        mx = jnp.max(jnp.where(valid, h, -jnp.inf))
        # One scalar divide, then a single VPU multiply-add per element
        # (instead of a per-element divide plus a separate *255 sweep).
        scale = 255.0 / (mx - mn)   # NOTE: like PyTorch, NaN/Inf if constant.
        o_ref[...] = (h - mn) * scale

    return kernel


# ----------------------------- Model wrapper -------------------------------

def growing_linear_layer_dims(channels, height, width, latent_dim,
                              layer_growth=1.1):
    """Replicates GrowingLinearGenerator.__init__ layer-size arithmetic."""
    chw = channels * height * width
    quotient, remainder = divmod(math.log(chw / latent_dim, layer_growth), 1)
    dims = []
    for layer in range(int(quotient)):
        dims.append((int(latent_dim * layer_growth ** layer),
                     int(latent_dim * layer_growth ** (layer + 1))))
    if remainder != 0:
        dims.append((int(latent_dim * layer_growth ** quotient), chw))
    # NOTE: like the PyTorch module, when remainder == 0 no final (*, chw)
    # layer is appended (latent bug of the reference formula).
    return dims


def init_params(key, dims):
    """PyTorch-Linear-style init: U(-1/sqrt(fan_in), +1/sqrt(fan_in)).

    Weights are stored as (in_features, out_features) -- transposed w.r.t.
    PyTorch's (out, in) -- so the kernel computes y = x @ W + b on the MXU.
    """
    params = []
    for (din, dout) in dims:
        key, kw, kb = jax.random.split(key, 3)
        bound = 1.0 / math.sqrt(din)
        w = jax.random.uniform(kw, (din, dout), jnp.float32, -bound, bound)
        b = jax.random.uniform(kb, (1, dout), jnp.float32, -bound, bound)
        params.append((w, b))
    return key, params


def pad_params(params):
    """Zero-pad every layer to lane-aligned shapes (done ONCE at init)."""
    padded = []
    for w, b in params:
        din, dout = w.shape
        din_p, dout_p = _round_up(din, _LANE), _round_up(dout, _LANE)
        wp = jnp.zeros((din_p, dout_p), jnp.float32).at[:din, :dout].set(w)
        bp = jnp.zeros((1, dout_p), jnp.float32).at[:, :dout].set(b)
        padded.append((wp, bp))
    return padded


@functools.partial(jax.jit, static_argnums=(2,))
def growing_linear_generator_forward(x, padded_params, image_shape):
    """x: (B, latent_dim) -> (B, C, H, W) float32, values in [0, 255]."""
    B, latent = x.shape
    C, H, W = image_shape
    chw = C * H * W
    num_layers = len(padded_params)

    lat_p = padded_params[0][0].shape[0]     # padded latent width
    dout_p = padded_params[-1][0].shape[1]   # padded final width
    b_p = _round_up(max(B, _SUBLANE), _SUBLANE)

    # Pad the latent batch once (sublane-aligned rows, lane-aligned features).
    x_p = jnp.zeros((b_p, lat_p), jnp.float32).at[:B, :latent].set(x)

    flat_wb = [a for wb in padded_params for a in wb]
    vmem = pl.BlockSpec(memory_space=pltpu.MemorySpace.VMEM)

    kernel = _make_fused_generator_kernel(num_layers, B, chw)
    # TODO(synk): if C*H*W (final weight) is scaled up, tile its N axis with a
    # grid + accumulator and set pltpu.CompilerParams(vmem_limit_bytes=...) to
    # stay under v7x's 64 MiB VMEM; at these sizes everything fits trivially.
    out = pl.pallas_call(
        kernel,
        out_shape=jax.ShapeDtypeStruct((b_p, dout_p), jnp.float32),
        in_specs=[vmem] * (1 + 2 * num_layers),
        out_specs=vmem,
    )(x_p, *flat_wb)

    img = out[:B, :chw]
    return img.reshape(B, C, H, W)           # NCHW, matches PyTorch reshape


# --------------------------------- main -------------------------------------

if __name__ == "__main__":
    # Shapes consistent with the module: output_shape=(B, 1, 16, 16),
    # latent_space_dimension=128, layer_growth=1.1  ->  8 Linear+ReLU layers.
    B, C, H, W = 2, 1, 16, 16
    latent_dim = 128
    layer_growth = 1.1

    dims = growing_linear_layer_dims(C, H, W, latent_dim, layer_growth)

    key = jax.random.PRNGKey(0)
    key, params = init_params(key, dims)
    padded = pad_params(params)

    key, kx = jax.random.split(key)
    x = jax.random.normal(kx, (B, latent_dim), dtype=jnp.float32)

    out = growing_linear_generator_forward(x, padded, (C, H, W))
    out = jax.block_until_ready(out)

    # Structural checks.
    assert out.shape == (B, C, H, W), out.shape
    assert out.dtype == jnp.float32
    assert bool(jnp.isfinite(out).all())
    # The rescale guarantees the global min / max of the real image hit 0/255.
    assert abs(float(out.min()) - 0.0) < 1e-2, float(out.min())
    assert abs(float(out.max()) - 255.0) < 1e-2, float(out.max())

    # Pure-JAX reference check (tolerance is loose only to absorb possible
    # MXU f32-pass rounding differences; structural bugs give errors of tens
    # to hundreds on the 0..255 scale).
    h = x
    for w, b in params:
        h = jnp.maximum(
            jnp.dot(h, w, precision=jax.lax.Precision.HIGHEST) + b, 0.0)
    mn, mx = h.min(), h.max()
    ref = ((h - mn) / (mx - mn) * 255.0).reshape(B, C, H, W)
    max_err = float(jnp.max(jnp.abs(out - ref)))
    assert max_err < 8.0, max_err

    print("KERNEL_OK")
</pallas_src>

<mosaic_0001>
module attributes {stable_mosaic.version = 11 : i64} {
  func.func @kernel(%arg0: memref<8x128xf32, #tpu.memory_space<vmem>>, %arg1: memref<128x256xf32, #tpu.memory_space<vmem>>, %arg2: memref<1x256xf32, #tpu.memory_space<vmem>>, %arg3: memref<256x256xf32, #tpu.memory_space<vmem>>, %arg4: memref<1x256xf32, #tpu.memory_space<vmem>>, %arg5: memref<256x256xf32, #tpu.memory_space<vmem>>, %arg6: memref<1x256xf32, #tpu.memory_space<vmem>>, %arg7: memref<256x256xf32, #tpu.memory_space<vmem>>, %arg8: memref<1x256xf32, #tpu.memory_space<vmem>>, %arg9: memref<256x256xf32, #tpu.memory_space<vmem>>, %arg10: memref<1x256xf32, #tpu.memory_space<vmem>>, %arg11: memref<256x256xf32, #tpu.memory_space<vmem>>, %arg12: memref<1x256xf32, #tpu.memory_space<vmem>>, %arg13: memref<256x256xf32, #tpu.memory_space<vmem>>, %arg14: memref<1x256xf32, #tpu.memory_space<vmem>>, %arg15: memref<256x256xf32, #tpu.memory_space<vmem>>, %arg16: memref<1x256xf32, #tpu.memory_space<vmem>>, %arg17: memref<8x256xf32, #tpu.memory_space<vmem>>) attributes {dimension_semantics = [], scalar_prefetch = 0 : i64, scratch_operands = 0 : i64, tpu.core_type = #tpu.core_type<tc>} {
    %c0 = arith.constant 0 : index
    %c0_0 = arith.constant 0 : index
    %0 = vector.load %arg0[%c0, %c0_0] : memref<8x128xf32, #tpu.memory_space<vmem>>, vector<8x128xf32>
    %c0_1 = arith.constant 0 : index
    %c0_2 = arith.constant 0 : index
    %1 = vector.load %arg1[%c0_1, %c0_2] : memref<128x256xf32, #tpu.memory_space<vmem>>, vector<128x256xf32>
    %c0_3 = arith.constant 0 : index
    %c0_4 = arith.constant 0 : index
    %2 = vector.load %arg2[%c0_3, %c0_4] : memref<1x256xf32, #tpu.memory_space<vmem>>, vector<1x256xf32>
    %cst = arith.constant dense<0.000000e+00> : vector<8x256xf32>
    %3 = tpu.matmul %0, %1, %cst {dimension_numbers = #tpu.dot_dimension_numbers<[1], [0], [0], [1], [0, 0, 1, 1], [], []>} : vector<8x128xf32>, vector<128x256xf32>, vector<8x256xf32> -> vector<8x256xf32>
    %4 = vector.broadcast %2 : vector<1x256xf32> to vector<8x256xf32>
    %5 = arith.addf %3, %4 : vector<8x256xf32>
    %cst_5 = arith.constant 0.000000e+00 : f32
    %6 = vector.broadcast %cst_5 : f32 to vector<8x256xf32>
    %7 = arith.maximumf %5, %6 : vector<8x256xf32>
    %c0_6 = arith.constant 0 : index
    %c0_7 = arith.constant 0 : index
    %8 = vector.load %arg3[%c0_6, %c0_7] : memref<256x256xf32, #tpu.memory_space<vmem>>, vector<256x256xf32>
    %c0_8 = arith.constant 0 : index
    %c0_9 = arith.constant 0 : index
    %9 = vector.load %arg4[%c0_8, %c0_9] : memref<1x256xf32, #tpu.memory_space<vmem>>, vector<1x256xf32>
    %cst_10 = arith.constant dense<0.000000e+00> : vector<8x256xf32>
    %10 = tpu.matmul %7, %8, %cst_10 {dimension_numbers = #tpu.dot_dimension_numbers<[1], [0], [0], [1], [0, 0, 1, 1], [], []>} : vector<8x256xf32>, vector<256x256xf32>, vector<8x256xf32> -> vector<8x256xf32>
    %11 = vector.broadcast %9 : vector<1x256xf32> to vector<8x256xf32>
    %12 = arith.addf %10, %11 : vector<8x256xf32>
    %cst_11 = arith.constant 0.000000e+00 : f32
    %13 = vector.broadcast %cst_11 : f32 to vector<8x256xf32>
    %14 = arith.maximumf %12, %13 : vector<8x256xf32>
    %c0_12 = arith.constant 0 : index
    %c0_13 = arith.constant 0 : index
    %15 = vector.load %arg5[%c0_12, %c0_13] : memref<256x256xf32, #tpu.memory_space<vmem>>, vector<256x256xf32>
    %c0_14 = arith.constant 0 : index
    %c0_15 = arith.constant 0 : index
    %16 = vector.load %arg6[%c0_14, %c0_15] : memref<1x256xf32, #tpu.memory_space<vmem>>, vector<1x256xf32>
    %cst_16 = arith.constant dense<0.000000e+00> : vector<8x256xf32>
    %17 = tpu.matmul %14, %15, %cst_16 {dimension_numbers = #tpu.dot_dimension_numbers<[1], [0], [0], [1], [0, 0, 1, 1], [], []>} : vector<8x256xf32>, vector<256x256xf32>, vector<8x256xf32> -> vector<8x256xf32>
    %18 = vector.broadcast %16 : vector<1x256xf32> to vector<8x256xf32>
    %19 = arith.addf %17, %18 : vector<8x256xf32>
    %cst_17 = arith.constant 0.000000e+00 : f32
    %20 = vector.broadcast %cst_17 : f32 to vector<8x256xf32>
    %21 = arith.maximumf %19, %20 : vector<8x256xf32>
    %c0_18 = arith.constant 0 : index
    %c0_19 = arith.constant 0 : index
    %22 = vector.load %arg7[%c0_18, %c0_19] : memref<256x256xf32, #tpu.memory_space<vmem>>, vector<256x256xf32>
    %c0_20 = arith.constant 0 : index
    %c0_21 = arith.constant 0 : index
    %23 = vector.load %arg8[%c0_20, %c0_21] : memref<1x256xf32, #tpu.memory_space<vmem>>, vector<1x256xf32>
    %cst_22 = arith.constant dense<0.000000e+00> : vector<8x256xf32>
    %24 = tpu.matmul %21, %22, %cst_22 {dimension_numbers = #tpu.dot_dimension_numbers<[1], [0], [0], [1], [0, 0, 1, 1], [], []>} : vector<8x256xf32>, vector<256x256xf32>, vector<8x256xf32> -> vector<8x256xf32>
    %25 = vector.broadcast %23 : vector<1x256xf32> to vector<8x256xf32>
    %26 = arith.addf %24, %25 : vector<8x256xf32>
    %cst_23 = arith.constant 0.000000e+00 : f32
    %27 = vector.broadcast %cst_23 : f32 to vector<8x256xf32>
    %28 = arith.maximumf %26, %27 : vector<8x256xf32>
    %c0_24 = arith.constant 0 : index
    %c0_25 = arith.constant 0 : index
    %29 = vector.load %arg9[%c0_24, %c0_25] : memref<256x256xf32, #tpu.memory_space<vmem>>, vector<256x256xf32>
    %c0_26 = arith.constant 0 : index
    %c0_27 = arith.constant 0 : index
    %30 = vector.load %arg10[%c0_26, %c0_27] : memref<1x256xf32, #tpu.memory_space<vmem>>, vector<1x256xf32>
    %cst_28 = arith.constant dense<0.000000e+00> : vector<8x256xf32>
    %31 = tpu.matmul %28, %29, %cst_28 {dimension_numbers = #tpu.dot_dimension_numbers<[1], [0], [0], [1], [0, 0, 1, 1], [], []>} : vector<8x256xf32>, vector<256x256xf32>, vector<8x256xf32> -> vector<8x256xf32>
    %32 = vector.broadcast %30 : vector<1x256xf32> to vector<8x256xf32>
    %33 = arith.addf %31, %32 : vector<8x256xf32>
    %cst_29 = arith.constant 0.000000e+00 : f32
    %34 = vector.broadcast %cst_29 : f32 to vector<8x256xf32>
    %35 = arith.maximumf %33, %34 : vector<8x256xf32>
    %c0_30 = arith.constant 0 : index
    %c0_31 = arith.constant 0 : index
    %36 = vector.load %arg11[%c0_30, %c0_31] : memref<256x256xf32, #tpu.memory_space<vmem>>, vector<256x256xf32>
    %c0_32 = arith.constant 0 : index
    %c0_33 = arith.constant 0 : index
    %37 = vector.load %arg12[%c0_32, %c0_33] : memref<1x256xf32, #tpu.memory_space<vmem>>, vector<1x256xf32>
    %cst_34 = arith.constant dense<0.000000e+00> : vector<8x256xf32>
    %38 = tpu.matmul %35, %36, %cst_34 {dimension_numbers = #tpu.dot_dimension_numbers<[1], [0], [0], [1], [0, 0, 1, 1], [], []>} : vector<8x256xf32>, vector<256x256xf32>, vector<8x256xf32> -> vector<8x256xf32>
    %39 = vector.broadcast %37 : vector<1x256xf32> to vector<8x256xf32>
    %40 = arith.addf %38, %39 : vector<8x256xf32>
    %cst_35 = arith.constant 0.000000e+00 : f32
    %41 = vector.broadcast %cst_35 : f32 to vector<8x256xf32>
    %42 = arith.maximumf %40, %41 : vector<8x256xf32>
    %c0_36 = arith.constant 0 : index
    %c0_37 = arith.constant 0 : index
    %43 = vector.load %arg13[%c0_36, %c0_37] : memref<256x256xf32, #tpu.memory_space<vmem>>, vector<256x256xf32>
    %c0_38 = arith.constant 0 : index
    %c0_39 = arith.constant 0 : index
    %44 = vector.load %arg14[%c0_38, %c0_39] : memref<1x256xf32, #tpu.memory_space<vmem>>, vector<1x256xf32>
    %cst_40 = arith.constant dense<0.000000e+00> : vector<8x256xf32>
    %45 = tpu.matmul %42, %43, %cst_40 {dimension_numbers = #tpu.dot_dimension_numbers<[1], [0], [0], [1], [0, 0, 1, 1], [], []>} : vector<8x256xf32>, vector<256x256xf32>, vector<8x256xf32> -> vector<8x256xf32>
    %46 = vector.broadcast %44 : vector<1x256xf32> to vector<8x256xf32>
    %47 = arith.addf %45, %46 : vector<8x256xf32>
    %cst_41 = arith.constant 0.000000e+00 : f32
    %48 = vector.broadcast %cst_41 : f32 to vector<8x256xf32>
    %49 = arith.maximumf %47, %48 : vector<8x256xf32>
    %c0_42 = arith.constant 0 : index
    %c0_43 = arith.constant 0 : index
    %50 = vector.load %arg15[%c0_42, %c0_43] : memref<256x256xf32, #tpu.memory_space<vmem>>, vector<256x256xf32>
    %c0_44 = arith.constant 0 : index
    %c0_45 = arith.constant 0 : index
    %51 = vector.load %arg16[%c0_44, %c0_45] : memref<1x256xf32, #tpu.memory_space<vmem>>, vector<1x256xf32>
    %cst_46 = arith.constant dense<0.000000e+00> : vector<8x256xf32>
    %52 = tpu.matmul %49, %50, %cst_46 {dimension_numbers = #tpu.dot_dimension_numbers<[1], [0], [0], [1], [0, 0, 1, 1], [], []>} : vector<8x256xf32>, vector<256x256xf32>, vector<8x256xf32> -> vector<8x256xf32>
    %53 = vector.broadcast %51 : vector<1x256xf32> to vector<8x256xf32>
    %54 = arith.addf %52, %53 : vector<8x256xf32>
    %cst_47 = arith.constant 0.000000e+00 : f32
    %55 = vector.broadcast %cst_47 : f32 to vector<8x256xf32>
    %56 = arith.maximumf %54, %55 : vector<8x256xf32>
    %57 = tpu.iota {dimensions = array<i32: 0>} : vector<8x256xi32>
    %58 = tpu.iota {dimensions = array<i32: 1>} : vector<8x256xi32>
    %c2_i32 = arith.constant 2 : i32
    %59 = vector.broadcast %c2_i32 : i32 to vector<8x256xi32>
    %60 = arith.cmpi slt, %57, %59 : vector<8x256xi32>
    %c256_i32 = arith.constant 256 : i32
    %61 = vector.broadcast %c256_i32 : i32 to vector<8x256xi32>
    %62 = arith.cmpi slt, %58, %61 : vector<8x256xi32>
    %63 = arith.andi %60, %62 : vector<8x256xi1>
    %cst_48 = arith.constant 0x7F800000 : f32
    %64 = vector.broadcast %cst_48 : f32 to vector<8x256xf32>
    %65 = arith.select %63, %56, %64 : vector<8x256xi1>, vector<8x256xf32>
    %66 = vector.shape_cast %65 : vector<8x256xf32> to vector<1x8x256xf32>
    %cst_49 = arith.constant dense<0x7F800000> : vector<1xf32>
    %67 = vector.multi_reduction <minimumf>, %66, %cst_49 [1, 2] : vector<1x8x256xf32> to vector<1xf32>
    %68 = vector.shape_cast %67 : vector<1xf32> to vector<1x1x1xf32>
    %69 = vector.extract %68[0, 0, 0] : f32 from vector<1x1x1xf32>
    %cst_50 = arith.constant 0xFF800000 : f32
    %70 = vector.broadcast %cst_50 : f32 to vector<8x256xf32>
    %71 = arith.select %63, %56, %70 : vector<8x256xi1>, vector<8x256xf32>
    %72 = vector.shape_cast %71 : vector<8x256xf32> to vector<1x8x256xf32>
    %cst_51 = arith.constant dense<0xFF800000> : vector<1xf32>
    %73 = vector.multi_reduction <maximumf>, %72, %cst_51 [1, 2] : vector<1x8x256xf32> to vector<1xf32>
    %74 = vector.shape_cast %73 : vector<1xf32> to vector<1x1x1xf32>
    %75 = vector.extract %74[0, 0, 0] : f32 from vector<1x1x1xf32>
    %76 = arith.subf %75, %69 : f32
    %cst_52 = arith.constant 2.550000e+02 : f32
    %77 = arith.divf %cst_52, %76 : f32
    %78 = vector.broadcast %69 : f32 to vector<8x256xf32>
    %79 = arith.subf %56, %78 : vector<8x256xf32>
    %80 = vector.broadcast %77 : f32 to vector<8x256xf32>
    %81 = arith.mulf %79, %80 : vector<8x256xf32>
    %c0_53 = arith.constant 0 : index
    %c0_54 = arith.constant 0 : index
    %82 = vector.load %arg17[%c0_53, %c0_54] : memref<8x256xf32, #tpu.memory_space<vmem>>, vector<8x256xf32>
    tpu.vector_store %arg17[%c0_53, %c0_54], %81 {strides = array<i32>} : memref<8x256xf32, #tpu.memory_space<vmem>>, vector<8x256xf32>,
    return
  }
}

</mosaic_0001>

<bundles_post_ra>
// kernel: growing_linear_generator_forward.1
= control target key start
LH: loop header
LB: loop body
LE: loop exit
PB: predicated region body
PF: predicated region fallthrough
CT: control target
= control target key end

     0   :  { %s1778_s0 = inlined_call_operand.vmem [shape: f32[8,128], index: 0, kind: input, shape index: {}]   ;;  %s1779_s1 = inlined_call_operand.hbm [shape: f32[128,256], index: 1, kind: input, shape index: {}]   ;;  %s1780_s2 = inlined_call_operand.vmem [shape: f32[1,256], index: 2, kind: input, shape index: {}]   ;;  %s1781_s3 = inlined_call_operand.hbm [shape: f32[256,256], index: 3, kind: input, shape index: {}]   ;;  %s1782_s4 = inlined_call_operand.vmem [shape: f32[1,256], index: 4, kind: input, shape index: {}]   ;;  %s1783_s5 = inlined_call_operand.hbm [shape: f32[256,256], index: 5, kind: input, shape index: {}]   ;;  %s1784_s6 = inlined_call_operand.vmem [shape: f32[1,256], index: 6, kind: input, shape index: {}]   ;;  %s1785_s7 = inlined_call_operand.hbm [shape: f32[256,256], index: 7, kind: input, shape index: {}]   ;;  %s1786_s8 = inlined_call_operand.vmem [shape: f32[1,256], index: 8, kind: input, shape index: {}]   ;;  %s1787_s9 = inlined_call_operand.hbm [shape: f32[256,256], index: 9, kind: input, shape index: {}]   ;;  %s1788_s10 = inlined_call_operand.vmem [shape: f32[1,256], index: 10, kind: input, shape index: {}]   ;;  %s1789_s11 = inlined_call_operand.hbm [shape: f32[256,256], index: 11, kind: input, shape index: {}]   ;;  %s1790_s12 = inlined_call_operand.vmem [shape: f32[1,256], index: 12, kind: input, shape index: {}]   ;;  %s1791_s13 = inlined_call_operand.hbm [shape: f32[256,256], index: 13, kind: input, shape index: {}]   ;;  %s1792_s14 = inlined_call_operand.vmem [shape: f32[1,256], index: 14, kind: input, shape index: {}]   ;;  %s1793_s15 = inlined_call_operand.hbm [shape: f32[256,256], index: 15, kind: input, shape index: {}]   ;;  %s1794_s16 = inlined_call_operand.vmem [shape: f32[1,256], index: 16, kind: input, shape index: {}]   ;;  %s1795_s17 = inlined_call_operand.vmem [shape: f32[8,256], index: 17, kind: output, shape index: {}]  }
   0x1   :  { %1796 = sst [smem:[#allocation20_spill]] %s1778_s0 }
   0x2   :  { %1797 = sst [smem:[#allocation21_spill]] %s1779_s1 }
   0x3   :  { %22 = vsyncpa [#allocation3], 0 }
   0x4   :  { %23 = vsyncpa [#allocation5], 0 }
   0x5   :  { %24 = vsyncpa [#allocation8], 0 }
   0x6   :  { %25 = vsyncpa [#allocation11], 0 }
   0x7   :  { %26 = vsyncpa [#allocation14], 0  ;;  %s1571_s24 = smov [#allocation4]   ;;  %s1572_s26 = smov [#allocation7]  }
   0x8   :  { %s48_s25 = sshll.u32 %s1571_s24, 4  ;;  %s76_s27 = sshll.u32 %s1572_s26, 4  ;;  %s49_s25 = int_to_ptr.vmem [resolvable:$true] %s48_s25  ;;  %s77_s27 = int_to_ptr.vmem [resolvable:$true] %s76_s27 }
   0x9   :  { %s1409_s28 = scalar_lea.vmem %s49_s25, 8192  ;;  %p1414_p1 = scmp.lt.s32.totalorder %s49_s25, %s49_s25 }
   0xa   :  { %p1410_p0 = scmp.ne.s32.totalorder %s49_s25, %s1409_s28  ;;  %p1415_p2 = scmp.lt.s32.totalorder %s1409_s28, %s1409_s28 }
   0xc   :  { %p1416_p3 = por %p1415_p2, %p1414_p1 }
   0xe   :  { %p1417_p4 = pnand %p1416_p3, %p1410_p0 }
  0x10   :  { %1420 = shalt.err (!%p1417_p4)
}
  0x11   :  { %s1573_s29 = smov 256   ;;  %s1574_s0 = smov 16  }
  0x12   :  { %54 = dma.hbm_to_vmem [thread:$0]  %s1781_s3, 8192, %s49_s25, [#allocation5], %s1573_s29, %s1573_s29, %s1574_s0  }
  0x13   :  { %s1429_s19 = scalar_lea.vmem %s77_s27, 8192  ;;  %p1434_p6 = scmp.lt.s32.totalorder %s77_s27, %s77_s27 }
  0x14   :  { %p1430_p5 = scmp.ne.s32.totalorder %s77_s27, %s1429_s19  ;;  %p1435_p7 = scmp.lt.s32.totalorder %s1429_s19, %s1429_s19 }
  0x16   :  { %p1436_p8 = por %p1435_p7, %p1434_p6 }
  0x18   :  { %p1437_p9 = pnand %p1436_p8, %p1430_p5 }
  0x1a   :  { %1440 = shalt.err (!%p1437_p9)
}
  0x1b   :  { %82 = dma.hbm_to_vmem [thread:$0]  %s1785_s7, 8192, %s77_s27, [#allocation8], %s1573_s29, %s1573_s29, %s1574_s0  }
  0x1c   :  { %s1575_s21 = smov [#allocation10]   ;;  %s1576_s23 = smov [#allocation2]  }
  0x1d   :  { %s104_s22 = sshll.u32 %s1575_s21, 4  ;;  %s34_s24 = sshll.u32 %s1576_s23, 4  ;;  %s105_s22 = int_to_ptr.vmem [resolvable:$true] %s104_s22  ;;  %s35_s24 = int_to_ptr.vmem [resolvable:$true] %s34_s24 }
  0x1e   :  { %s1449_s3 = scalar_lea.vmem %s105_s22, 8192  ;;  %p1454_p11 = scmp.lt.s32.totalorder %s105_s22, %s105_s22 }
  0x1f   :  { %p1450_p10 = scmp.ne.s32.totalorder %s105_s22, %s1449_s3  ;;  %p1455_p12 = scmp.lt.s32.totalorder %s1449_s3, %s1449_s3 }
  0x21   :  { %p1456_p13 = por %p1455_p12, %p1454_p11 }
  0x23   :  { %p1457_p0 = pnand %p1456_p13, %p1450_p10 }
  0x25   :  { %1460 = shalt.err (!%p1457_p0)
}
  0x26   :  { %110 = dma.hbm_to_vmem [thread:$0]  %s1789_s11, 8192, %s105_s22, [#allocation11], %s1573_s29, %s1573_s29, %s1574_s0  }
  0x27   :  { %s1469_s7 = scalar_lea.vmem %s35_s24, 4096  ;;  %p1474_p2 = scmp.lt.s32.totalorder %s35_s24, %s35_s24 }
  0x28   :  { %p1470_p1 = scmp.ne.s32.totalorder %s35_s24, %s1469_s7  ;;  %p1475_p3 = scmp.lt.s32.totalorder %s1469_s7, %s1469_s7 }
  0x2a   :  { %p1476_p4 = por %p1475_p3, %p1474_p2 }
  0x2c   :  { %p1477_p5 = pnand %p1476_p4, %p1470_p1 }
  0x2e   :  { %1480 = shalt.err (!%p1477_p5)
}
  0x2f   :  { %s1798_s30 = sld [smem:[#allocation21_spill]]  ;;  %s1577_s18 = smov [#allocation6]  }
  0x30   :  { %s62_s19 = sshll.u32 %s1577_s18, 4  ;;  %s1578_s1 = smov [#allocation9]   ;;  %s63_s19 = int_to_ptr.vmem [resolvable:$true] %s62_s19 }
  0x31   :  { %s90_s20 = sshll.u32 %s1578_s1, 4  ;;  %s1489_s11 = scalar_lea.vmem %s63_s19, 8192  ;;  %s91_s20 = int_to_ptr.vmem [resolvable:$true] %s90_s20 }
  0x32   :  { %p1490_p6 = scmp.ne.s32.totalorder %s63_s19, %s1489_s11  ;;  %p1494_p7 = scmp.lt.s32.totalorder %s63_s19, %s63_s19 }
  0x33   :  { %p1495_p8 = scmp.lt.s32.totalorder %s1489_s11, %s1489_s11 }
  0x35   :  { %40 = dma.hbm_to_vmem [thread:$0]  %s1798_s30, 4096, %s35_s24, [#allocation3], %s1573_s29, %s1573_s29, %s1574_s0  }
  0x36   :  { %p1496_p9 = por %p1495_p8, %p1494_p7 }
  0x38   :  { %p1497_p10 = pnand %p1496_p9, %p1490_p6 }
  0x3a   :  { %1500 = shalt.err (!%p1497_p10)
}
  0x3b   :  { %68 = dma.hbm_to_vmem [thread:$0]  %s1783_s5, 8192, %s63_s19, [#allocation5], %s1573_s29, %s1573_s29, %s1574_s0  }
  0x3c   :  { %s1509_s23 = scalar_lea.vmem %s91_s20, 8192  ;;  %p1514_p12 = scmp.lt.s32.totalorder %s91_s20, %s91_s20 }
  0x3d   :  { %p1510_p11 = scmp.ne.s32.totalorder %s91_s20, %s1509_s23  ;;  %p1515_p13 = scmp.lt.s32.totalorder %s1509_s23, %s1509_s23 }
  0x3f   :  { %p1516_p0 = por %p1515_p13, %p1514_p12 }
  0x41   :  { %p1517_p1 = pnand %p1516_p0, %p1510_p11 }
  0x43   :  { %1520 = shalt.err (!%p1517_p1)
}
  0x44   :  { %96 = dma.hbm_to_vmem [thread:$0]  %s1787_s9, 8192, %s91_s20, [#allocation8], %s1573_s29, %s1573_s29, %s1574_s0  }
  0x45   :  { %s1579_s25 = smov [#allocation12]   ;;  %s1580_s7 = smov [#allocation13]  }
  0x46   :  { %s118_s26 = sshll.u32 %s1579_s25, 4  ;;  %s132_s27 = sshll.u32 %s1580_s7, 4  ;;  %s119_s26 = int_to_ptr.vmem [resolvable:$true] %s118_s26  ;;  %s133_s27 = int_to_ptr.vmem [resolvable:$true] %s132_s27 }
  0x47   :  { %s1529_s5 = scalar_lea.vmem %s119_s26, 8192  ;;  %p1534_p3 = scmp.lt.s32.totalorder %s119_s26, %s119_s26 }
  0x48   :  { %p1530_p2 = scmp.ne.s32.totalorder %s119_s26, %s1529_s5  ;;  %p1535_p4 = scmp.lt.s32.totalorder %s1529_s5, %s1529_s5 }
  0x4a   :  { %p1536_p5 = por %p1535_p4, %p1534_p3 }
  0x4c   :  { %p1537_p6 = pnand %p1536_p5, %p1530_p2 }
  0x4e   :  { %1540 = shalt.err (!%p1537_p6)
}
  0x4f   :  { %124 = dma.hbm_to_vmem [thread:$0]  %s1791_s13, 8192, %s119_s26, [#allocation11], %s1573_s29, %s1573_s29, %s1574_s0  }
  0x50   :  { %s1549_s9 = scalar_lea.vmem %s133_s27, 8192  ;;  %p1554_p8 = scmp.lt.s32.totalorder %s133_s27, %s133_s27 }
  0x51   :  { %p1550_p7 = scmp.ne.s32.totalorder %s133_s27, %s1549_s9  ;;  %p1555_p9 = scmp.lt.s32.totalorder %s1549_s9, %s1549_s9 }
  0x53   :  { %p1556_p10 = por %p1555_p9, %p1554_p8 }
  0x55   :  { %p1557_p11 = pnand %p1556_p10, %p1550_p7 }
  0x57   :  { %1560 = shalt.err (!%p1557_p11)
}
  0x58   :  { %138 = dma.hbm_to_vmem [thread:$0]  %s1793_s15, 8192, %s133_s27, [#allocation14], %s1573_s29, %s1573_s29, %s1574_s0  }
  0x59   :  { %1561 = dma.done.wait [#allocation3], 4096  }
  0x5a   :  { %1562 = vsyncadd [#allocation3], 4294963200 }
  0x5b   :  { %1563 = dma.done.wait [#allocation5], 16384  }
  0x5c   :  { %1564 = vsyncadd [#allocation5], 4294950912 }
  0x5d   :  { %1565 = dma.done.wait [#allocation8], 16384  }
  0x5e   :  { %1566 = vsyncadd [#allocation8], 4294950912 }
  0x5f   :  { %1567 = dma.done.wait [#allocation11], 16384  }
  0x60   :  { %1568 = vsyncadd [#allocation11], 4294950912 }
  0x61   :  { %1569 = dma.done.wait [#allocation14], 8192  }
  0x62   :  { %1570 = vsyncadd [#allocation14], 4294959104  ;;  %v1581_v0 = vmov 0.0   ;;  %v197_v1 = vld [vmem:[#allocation2 + $0xf8] sm:$0xff]  ;;  %v196_v2 = vld [vmem:[#allocation2 + $0xf0] sm:$0xff]  ;;  %s1799_s29 = sld [smem:[#allocation20_spill]] }
  0x63   :  { %274 = vmatprep.mubr.f32.mxu0 %v1581_v0  ;;  %v195_v3 = vld [vmem:[#allocation2 + $0xe8] sm:$0xff]  ;;  %210 = vmatprep.subr.mxu0 %v197_v1  ;;  %v194_v4 = vld [vmem:[#allocation2 + $0xe0] sm:$0xff]  ;;  %v193_v5 = vld [vmem:[#allocation2 + $0xd8] sm:$0xff] }
  0x64   :  { %211 = vmatpush1.msra.mxu0 %v196_v2  ;;  %v192_v6 = vld [vmem:[#allocation2 + $0xd0] sm:$0xff]  ;;  %v191_v7 = vld [vmem:[#allocation2 + $0xc8] sm:$0xff]  ;;  %v190_v8 = vld [vmem:[#allocation2 + $0xc0] sm:$0xff] }
  0x65   :  { %212 = vmatprep.subr.mxu0 %v195_v3  ;;  %v189_v9 = vld [vmem:[#allocation2 + $0xb8] sm:$0xff]  ;;  %v188_v10 = vld [vmem:[#allocation2 + $0xb0] sm:$0xff]  ;;  %v187_v11 = vld [vmem:[#allocation2 + $0xa8] sm:$0xff] }
  0x66   :  { %213 = vmatpush1.msra.mxu0 %v194_v4  ;;  %v186_v12 = vld [vmem:[#allocation2 + $0xa0] sm:$0xff]  ;;  %v185_v13 = vld [vmem:[#allocation2 + $0x98] sm:$0xff]  ;;  %v184_v14 = vld [vmem:[#allocation2 + $0x90] sm:$0xff] }
  0x67   :  { %214 = vmatprep.subr.mxu0 %v193_v5  ;;  %v314_v15 = vld [vmem:[#allocation4 + $0xf8] sm:$0xff]  ;;  %v313_v16 = vld [vmem:[#allocation4 + $0xf0] sm:$0xff]  ;;  %v312_v17 = vld [vmem:[#allocation4 + $0xe8] sm:$0xff] }
  0x68   :  { %215 = vmatpush1.msra.mxu0 %v192_v6  ;;  %v183_v18 = vld [vmem:[#allocation2 + $0x88] sm:$0xff]  ;;  %359 = vmatprep.subr.mxu1 %v314_v15  ;;  %v311_v19 = vld [vmem:[#allocation4 + $0xe0] sm:$0xff]  ;;  %v310_v21 = vld [vmem:[#allocation4 + $0xd8] sm:$0xff] }
  0x69   :  { %216 = vmatprep.subr.mxu0 %v191_v7  ;;  %v182_v20 = vld [vmem:[#allocation2 + $0x80] sm:$0xff]  ;;  %360 = vmatpush1.msra.mxu1 %v313_v16  ;;  %v181_v22 = vld [vmem:[#allocation2 + $0x78] sm:$0xff]  ;;  %v309_v23 = vld [vmem:[#allocation4 + $0xd0] sm:$0xff] }
  0x6a   :  { %217 = vmatpush1.msra.mxu0 %v190_v8  ;;  %361 = vmatprep.subr.mxu1 %v312_v17  ;;  %v180_v24 = vld [vmem:[#allocation2 + $0x70] sm:$0xff]  ;;  %v308_v25 = vld [vmem:[#allocation4 + $0xc8] sm:$0xff]  ;;  %v307_v27 = vld [vmem:[#allocation4 + $0xc0] sm:$0xff] }
  0x6b   :  { %218 = vmatprep.subr.mxu0 %v189_v9  ;;  %362 = vmatpush1.msra.mxu1 %v311_v19  ;;  %v179_v26 = vld [vmem:[#allocation2 + $0x68] sm:$0xff]  ;;  %v178_v28 = vld [vmem:[#allocation2 + $0x60] sm:$0xff]  ;;  %v306_v29 = vld [vmem:[#allocation4 + $0xb8] sm:$0xff] }
  0x6c   :  { %219 = vmatpush1.msra.mxu0 %v188_v10  ;;  %363 = vmatprep.subr.mxu1 %v310_v21  ;;  %v177_v30 = vld [vmem:[#allocation2 + $0x58] sm:$0xff]  ;;  %v305_v31 = vld [vmem:[#allocation4 + $0xb0] sm:$0xff]  ;;  %v304_v33 = vld [vmem:[#allocation4 + $0xa8] sm:$0xff] }
  0x6d   :  { %220 = vmatprep.subr.mxu0 %v187_v11  ;;  %364 = vmatpush1.msra.mxu1 %v309_v23  ;;  %v176_v32 = vld [vmem:[#allocation2 + $0x50] sm:$0xff]  ;;  %v175_v34 = vld [vmem:[#allocation2 + $0x48] sm:$0xff]  ;;  %v303_v35 = vld [vmem:[#allocation4 + $0xa0] sm:$0xff] }
  0x6e   :  { %221 = vmatpush1.msra.mxu0 %v186_v12  ;;  %365 = vmatprep.subr.mxu1 %v308_v25  ;;  %v174_v36 = vld [vmem:[#allocation2 + $0x40] sm:$0xff]  ;;  %v302_v37 = vld [vmem:[#allocation4 + $0x98] sm:$0xff]  ;;  %v301_v39 = vld [vmem:[#allocation4 + $0x90] sm:$0xff] }
  0x6f   :  { %222 = vmatprep.subr.mxu0 %v185_v13  ;;  %366 = vmatpush1.msra.mxu1 %v307_v27  ;;  %v173_v38 = vld [vmem:[#allocation2 + $0x38] sm:$0xff]  ;;  %v172_v40 = vld [vmem:[#allocation2 + $0x30] sm:$0xff]  ;;  %v300_v41 = vld [vmem:[#allocation4 + $0x88] sm:$0xff] }
  0x70   :  { %223 = vmatpush1.msra.mxu0 %v184_v14  ;;  %367 = vmatprep.subr.mxu1 %v306_v29  ;;  %v171_v42 = vld [vmem:[#allocation2 + $0x28] sm:$0xff]  ;;  %v299_v43 = vld [vmem:[#allocation4 + $0x80] sm:$0xff]  ;;  %v298_v45 = vld [vmem:[#allocation4 + $0x78] sm:$0xff] }
  0x71   :  { %224 = vmatprep.subr.mxu0 %v183_v18  ;;  %368 = vmatpush1.msra.mxu1 %v305_v31  ;;  %v170_v44 = vld [vmem:[#allocation2 + $0x20] sm:$0xff]  ;;  %v169_v46 = vld [vmem:[#allocation2 + $0x18] sm:$0xff]  ;;  %v297_v47 = vld [vmem:[#allocation4 + $0x70] sm:$0xff] }
  0x72   :  { %225 = vmatpush1.msra.mxu0 %v182_v20  ;;  %369 = vmatprep.subr.mxu1 %v304_v33  ;;  %v168_v48 = vld [vmem:[#allocation2 + $0x10] sm:$0xff]  ;;  %v296_v49 = vld [vmem:[#allocation4 + $0x68] sm:$0xff]  ;;  %v295_v51 = vld [vmem:[#allocation4 + $0x60] sm:$0xff] }
  0x73   :  { %226 = vmatprep.subr.mxu0 %v181_v22  ;;  %370 = vmatpush1.msra.mxu1 %v303_v35  ;;  %v167_v50 = vld [vmem:[#allocation2 + $0x8] sm:$0xff]  ;;  %v166_v52 = vld [vmem:[#allocation2] sm:$0xff]  ;;  %v294_v53 = vld [vmem:[#allocation4 + $0x58] sm:$0xff] }
  0x74   :  { %227 = vmatpush1.msra.mxu0 %v180_v24  ;;  %371 = vmatprep.subr.mxu1 %v302_v37  ;;  %v165_v54 = vld [vmem:[%s1799_s29] sm:$0xff]  ;;  %v293_v55 = vld [vmem:[#allocation4 + $0x50] sm:$0xff]  ;;  %v292_v56 = vld [vmem:[#allocation4 + $0x48] sm:$0xff] }
  0x75   :  { %228 = vmatprep.subr.mxu0 %v179_v26  ;;  %372 = vmatpush1.msra.mxu1 %v301_v39  ;;  %v291_v57 = vld [vmem:[#allocation4 + $0x40] sm:$0xff]  ;;  %v290_v58 = vld [vmem:[#allocation4 + $0x38] sm:$0xff]  ;;  %v289_v59 = vld [vmem:[#allocation4 + $0x30] sm:$0xff] }
  0x76   :  { %229 = vmatpush1.msra.mxu0 %v178_v28  ;;  %373 = vmatprep.subr.mxu1 %v300_v41  ;;  %v288_v60 = vld [vmem:[#allocation4 + $0x28] sm:$0xff]  ;;  %v287_v61 = vld [vmem:[#allocation4 + $0x20] sm:$0xff]  ;;  %v286_v62 = vld [vmem:[#allocation4 + $0x18] sm:$0xff] }
  0x77   :  { %230 = vmatprep.subr.mxu0 %v177_v30  ;;  %374 = vmatpush1.msra.mxu1 %v299_v43  ;;  %v285_v63 = vld [vmem:[#allocation4 + $0x10] sm:$0xff]  ;;  %v284_v0 = vld [vmem:[#allocation4 + $0x8] sm:$0xff]  ;;  %v283_v1 = vld [vmem:[#allocation4] sm:$0xff] }
  0x78   :  { %231 = vmatpush1.msra.mxu0 %v176_v32  ;;  %375 = vmatprep.subr.mxu1 %v298_v45  ;;  %v346_v2 = vld [vmem:[#allocation4 + $0x1f8] sm:$0xff]  ;;  %v345_v3 = vld [vmem:[#allocation4 + $0x1f0] sm:$0xff]  ;;  %v344_v4 = vld [vmem:[#allocation4 + $0x1e8] sm:$0xff] }
  0x79   :  { %232 = vmatprep.subr.mxu0 %v175_v34  ;;  %376 = vmatpush1.msra.mxu1 %v297_v47  ;;  %v343_v5 = vld [vmem:[#allocation4 + $0x1e0] sm:$0xff]  ;;  %v342_v6 = vld [vmem:[#allocation4 + $0x1d8] sm:$0xff]  ;;  %v341_v7 = vld [vmem:[#allocation4 + $0x1d0] sm:$0xff] }
  0x7a   :  { %233 = vmatpush1.msra.mxu0 %v174_v36  ;;  %377 = vmatprep.subr.mxu1 %v296_v49  ;;  %v340_v8 = vld [vmem:[#allocation4 + $0x1c8] sm:$0xff]  ;;  %v339_v9 = vld [vmem:[#allocation4 + $0x1c0] sm:$0xff]  ;;  %v338_v10 = vld [vmem:[#allocation4 + $0x1b8] sm:$0xff] }
  0x7b   :  { %234 = vmatprep.subr.mxu0 %v173_v38  ;;  %378 = vmatpush1.msra.mxu1 %v295_v51  ;;  %v337_v11 = vld [vmem:[#allocation4 + $0x1b0] sm:$0xff]  ;;  %v336_v12 = vld [vmem:[#allocation4 + $0x1a8] sm:$0xff]  ;;  %v335_v13 = vld [vmem:[#allocation4 + $0x1a0] sm:$0xff] }
  0x7c   :  { %235 = vmatpush1.msra.mxu0 %v172_v40  ;;  %379 = vmatprep.subr.mxu1 %v294_v53  ;;  %v334_v14 = vld [vmem:[#allocation4 + $0x198] sm:$0xff]  ;;  %v333_v15 = vld [vmem:[#allocation4 + $0x190] sm:$0xff]  ;;  %v332_v16 = vld [vmem:[#allocation4 + $0x188] sm:$0xff] }
  0x7d   :  { %236 = vmatprep.subr.mxu0 %v171_v42  ;;  %380 = vmatpush1.msra.mxu1 %v293_v55  ;;  %v331_v17 = vld [vmem:[#allocation4 + $0x180] sm:$0xff]  ;;  %v330_v18 = vld [vmem:[#allocation4 + $0x178] sm:$0xff]  ;;  %v329_v19 = vld [vmem:[#allocation4 + $0x170] sm:$0xff] }
  0x7e   :  { %237 = vmatpush1.msra.mxu0 %v170_v44  ;;  %381 = vmatprep.subr.mxu1 %v292_v56  ;;  %v328_v20 = vld [vmem:[#allocation4 + $0x168] sm:$0xff]  ;;  %v327_v21 = vld [vmem:[#allocation4 + $0x160] sm:$0xff]  ;;  %v326_v22 = vld [vmem:[#allocation4 + $0x158] sm:$0xff] }
  0x7f   :  { %238 = vmatprep.subr.mxu0 %v169_v46  ;;  %382 = vmatpush1.msra.mxu1 %v291_v57  ;;  %v325_v23 = vld [vmem:[#allocation4 + $0x150] sm:$0xff]  ;;  %v324_v24 = vld [vmem:[#allocation4 + $0x148] sm:$0xff]  ;;  %v323_v25 = vld [vmem:[#allocation4 + $0x140] sm:$0xff] }
  0x80   :  { %239 = vmatpush1.msra.mxu0 %v168_v48  ;;  %383 = vmatprep.subr.mxu1 %v290_v58  ;;  %v322_v26 = vld [vmem:[#allocation4 + $0x138] sm:$0xff]  ;;  %v321_v27 = vld [vmem:[#allocation4 + $0x130] sm:$0xff]  ;;  %v320_v28 = vld [vmem:[#allocation4 + $0x128] sm:$0xff] }
  0x81   :  { %240 = vmatprep.subr.mxu0 %v167_v50  ;;  %384 = vmatpush1.msra.mxu1 %v289_v59  ;;  %v319_v29 = vld [vmem:[#allocation4 + $0x120] sm:$0xff]  ;;  %v318_v30 = vld [vmem:[#allocation4 + $0x118] sm:$0xff]  ;;  %v317_v31 = vld [vmem:[#allocation4 + $0x110] sm:$0xff] }
  0x82   :  { %241 = vmatpush1.msra.mxu0 %v166_v52  ;;  %385 = vmatprep.subr.mxu1 %v288_v60  ;;  %v316_v32 = vld [vmem:[#allocation4 + $0x108] sm:$0xff]  ;;  %v315_v33 = vld [vmem:[#allocation4 + $0x100] sm:$0xff]  ;;  %v463_v34 = vld [vmem:[#allocation6 + $0xf8] sm:$0xff] }
  0x83   :  { %275 = vmatmul.mubr.f32.vlgmr.msra.gmra.mxu0 %v165_v54  ;;  %386 = vmatpush1.msra.mxu1 %v287_v61  ;;  %v462_v35 = vld [vmem:[#allocation6 + $0xf0] sm:$0xff]  ;;  %v461_v36 = vld [vmem:[#allocation6 + $0xe8] sm:$0xff]  ;;  %v460_v37 = vld [vmem:[#allocation6 + $0xe0] sm:$0xff] }
  0x84   :  { %387 = vmatprep.subr.mxu1 %v286_v62  ;;  %508 = vmatprep.subr.mxu0 %v463_v34  ;;  %v459_v38 = vld [vmem:[#allocation6 + $0xd8] sm:$0xff]  ;;  %v458_v39 = vld [vmem:[#allocation6 + $0xd0] sm:$0xff]  ;;  %v457_v40 = vld [vmem:[#allocation6 + $0xc8] sm:$0xff] }
  0x85   :  { %388 = vmatpush1.msra.mxu1 %v285_v63  ;;  %509 = vmatpush1.msra.mxu0 %v462_v35  ;;  %v456_v41 = vld [vmem:[#allocation6 + $0xc0] sm:$0xff]  ;;  %v455_v42 = vld [vmem:[#allocation6 + $0xb8] sm:$0xff]  ;;  %v454_v43 = vld [vmem:[#allocation6 + $0xb0] sm:$0xff] }
  0x86   :  { %389 = vmatprep.subr.mxu1 %v284_v0  ;;  %510 = vmatprep.subr.mxu0 %v461_v36  ;;  %v453_v44 = vld [vmem:[#allocation6 + $0xa8] sm:$0xff]  ;;  %v452_v45 = vld [vmem:[#allocation6 + $0xa0] sm:$0xff]  ;;  %v451_v46 = vld [vmem:[#allocation6 + $0x98] sm:$0xff] }
  0x87   :  { %390 = vmatpush1.msra.mxu1 %v283_v1  ;;  %511 = vmatpush1.msra.mxu0 %v460_v37  ;;  %v450_v47 = vld [vmem:[#allocation6 + $0x90] sm:$0xff]  ;;  %v449_v48 = vld [vmem:[#allocation6 + $0x88] sm:$0xff]  ;;  %v448_v49 = vld [vmem:[#allocation6 + $0x80] sm:$0xff] }
  0x88   :  { %391 = vmatprep.subr.mxu1 %v346_v2  ;;  %512 = vmatprep.subr.mxu0 %v459_v38  ;;  %v447_v50 = vld [vmem:[#allocation6 + $0x78] sm:$0xff]  ;;  %v446_v51 = vld [vmem:[#allocation6 + $0x70] sm:$0xff]  ;;  %v445_v52 = vld [vmem:[#allocation6 + $0x68] sm:$0xff] }
  0x89   :  { %392 = vmatpush2.msra.mxu1 %v345_v3  ;;  %513 = vmatpush1.msra.mxu0 %v458_v39  ;;  %v444_v53 = vld [vmem:[#allocation6 + $0x60] sm:$0xff]  ;;  %v443_v54 = vld [vmem:[#allocation6 + $0x58] sm:$0xff]  ;;  %v442_v55 = vld [vmem:[#allocation6 + $0x50] sm:$0xff] }
  0x8a   :  { %393 = vmatprep.subr.mxu1 %v344_v4  ;;  %514 = vmatprep.subr.mxu0 %v457_v40  ;;  %v441_v56 = vld [vmem:[#allocation6 + $0x48] sm:$0xff]  ;;  %v440_v57 = vld [vmem:[#allocation6 + $0x40] sm:$0xff]  ;;  %v439_v58 = vld [vmem:[#allocation6 + $0x38] sm:$0xff] }
  0x8b   :  { %394 = vmatpush2.msra.mxu1 %v343_v5  ;;  %515 = vmatpush1.msra.mxu0 %v456_v41  ;;  %v438_v59 = vld [vmem:[#allocation6 + $0x30] sm:$0xff]  ;;  %v437_v60 = vld [vmem:[#allocation6 + $0x28] sm:$0xff]  ;;  %v436_v61 = vld [vmem:[#allocation6 + $0x20] sm:$0xff] }
  0x8c   :  { %395 = vmatprep.subr.mxu1 %v342_v6  ;;  %516 = vmatprep.subr.mxu0 %v455_v42  ;;  %v435_v62 = vld [vmem:[#allocation6 + $0x18] sm:$0xff]  ;;  %v434_v63 = vld [vmem:[#allocation6 + $0x10] sm:$0xff]  ;;  %v433_v0 = vld [vmem:[#allocation6 + $0x8] sm:$0xff] }
  0x8d   :  { %396 = vmatpush2.msra.mxu1 %v341_v7  ;;  %517 = vmatpush1.msra.mxu0 %v454_v43  ;;  %v432_v1 = vld [vmem:[#allocation6] sm:$0xff]  ;;  %v495_v2 = vld [vmem:[#allocation6 + $0x1f8] sm:$0xff]  ;;  %v494_v3 = vld [vmem:[#allocation6 + $0x1f0] sm:$0xff] }
  0x8e   :  { %397 = vmatprep.subr.mxu1 %v340_v8  ;;  %518 = vmatprep.subr.mxu0 %v453_v44  ;;  %v493_v4 = vld [vmem:[#allocation6 + $0x1e8] sm:$0xff]  ;;  %v492_v5 = vld [vmem:[#allocation6 + $0x1e0] sm:$0xff]  ;;  %v491_v6 = vld [vmem:[#allocation6 + $0x1d8] sm:$0xff] }
  0x8f   :  { %398 = vmatpush2.msra.mxu1 %v339_v9  ;;  %519 = vmatpush1.msra.mxu0 %v452_v45  ;;  %v490_v7 = vld [vmem:[#allocation6 + $0x1d0] sm:$0xff]  ;;  %v489_v8 = vld [vmem:[#allocation6 + $0x1c8] sm:$0xff]  ;;  %v488_v9 = vld [vmem:[#allocation6 + $0x1c0] sm:$0xff] }
  0x90   :  { %399 = vmatprep.subr.mxu1 %v338_v10  ;;  %520 = vmatprep.subr.mxu0 %v451_v46  ;;  %v487_v10 = vld [vmem:[#allocation6 + $0x1b8] sm:$0xff]  ;;  %v470_v40 = vld [vmem:[#allocation6 + $0x130] sm:$0xff]  ;;  %v469_v41 = vld [vmem:[#allocation6 + $0x128] sm:$0xff] }
  0x91   :  { %400 = vmatpush2.msra.mxu1 %v337_v11  ;;  %521 = vmatpush1.msra.mxu0 %v450_v47  ;;  %v486_v11 = vld [vmem:[#allocation6 + $0x1b0] sm:$0xff]  ;;  %v471_v39 = vld [vmem:[#allocation6 + $0x138] sm:$0xff]  ;;  %v468_v42 = vld [vmem:[#allocation6 + $0x120] sm:$0xff] }
  0x92   :  { %401 = vmatprep.subr.mxu1 %v336_v12  ;;  %522 = vmatprep.subr.mxu0 %v449_v48  ;;  %v485_v12 = vld [vmem:[#allocation6 + $0x1a8] sm:$0xff]  ;;  %v467_v43 = vld [vmem:[#allocation6 + $0x118] sm:$0xff]  ;;  %v466_v44 = vld [vmem:[#allocation6 + $0x110] sm:$0xff] }
  0x93   :  { %402 = vmatpush2.msra.mxu1 %v335_v13  ;;  %523 = vmatpush1.msra.mxu0 %v448_v49  ;;  %v484_v13 = vld [vmem:[#allocation6 + $0x1a0] sm:$0xff]  ;;  %v465_v45 = vld [vmem:[#allocation6 + $0x108] sm:$0xff]  ;;  %v612_v47 = vld [vmem:[#allocation7 + $0xf8] sm:$0xff] }
  0x94   :  { %403 = vmatprep.subr.mxu1 %v334_v14  ;;  %524 = vmatprep.subr.mxu0 %v447_v50  ;;  %v483_v14 = vld [vmem:[#allocation6 + $0x198] sm:$0xff]  ;;  %v464_v46 = vld [vmem:[#allocation6 + $0x100] sm:$0xff]  ;;  %v611_v48 = vld [vmem:[#allocation7 + $0xf0] sm:$0xff] }
  0x95   :  { %404 = vmatpush2.msra.mxu1 %v333_v15  ;;  %525 = vmatpush1.msra.mxu0 %v446_v51  ;;  %v482_v15 = vld [vmem:[#allocation6 + $0x190] sm:$0xff]  ;;  %v610_v49 = vld [vmem:[#allocation7 + $0xe8] sm:$0xff]  ;;  %v609_v50 = vld [vmem:[#allocation7 + $0xe0] sm:$0xff] }
  0x96   :  { %405 = vmatprep.subr.mxu1 %v332_v16  ;;  %526 = vmatprep.subr.mxu0 %v445_v52  ;;  %v481_v16 = vld [vmem:[#allocation6 + $0x188] sm:$0xff]  ;;  %v608_v51 = vld [vmem:[#allocation7 + $0xd8] sm:$0xff]  ;;  %v607_v52 = vld [vmem:[#allocation7 + $0xd0] sm:$0xff] }
  0x97   :  { %406 = vmatpush2.msra.mxu1 %v331_v17  ;;  %527 = vmatpush1.msra.mxu0 %v444_v53  ;;  %v480_v17 = vld [vmem:[#allocation6 + $0x180] sm:$0xff]  ;;  %v606_v53 = vld [vmem:[#allocation7 + $0xc8] sm:$0xff] }
  0x98   :  { %407 = vmatprep.subr.mxu1 %v330_v18  ;;  %528 = vmatprep.subr.mxu0 %v443_v54  ;;  %v479_v18 = vld [vmem:[#allocation6 + $0x178] sm:$0xff]  ;;  %v605_v54 = vld [vmem:[#allocation7 + $0xc0] sm:$0xff] }
  0x99   :  { %408 = vmatpush2.msra.mxu1 %v329_v19  ;;  %529 = vmatpush1.msra.mxu0 %v442_v55  ;;  %v478_v19 = vld [vmem:[#allocation6 + $0x170] sm:$0xff]  ;;  %v604_v55 = vld [vmem:[#allocation7 + $0xb8] sm:$0xff] }
  0x9a   :  { %409 = vmatprep.subr.mxu1 %v328_v20  ;;  %530 = vmatprep.subr.mxu0 %v441_v56  ;;  %v477_v20 = vld [vmem:[#allocation6 + $0x168] sm:$0xff]  ;;  %v603_v56 = vld [vmem:[#allocation7 + $0xb0] sm:$0xff] }
  0x9b   :  { %410 = vmatpush2.msra.mxu1 %v327_v21  ;;  %531 = vmatpush1.msra.mxu0 %v440_v57  ;;  %v476_v21 = vld [vmem:[#allocation6 + $0x160] sm:$0xff]  ;;  %v602_v57 = vld [vmem:[#allocation7 + $0xa8] sm:$0xff] }
  0x9c   :  { %411 = vmatprep.subr.mxu1 %v326_v22  ;;  %532 = vmatprep.subr.mxu0 %v439_v58  ;;  %v475_v22 = vld [vmem:[#allocation6 + $0x158] sm:$0xff]  ;;  %v601_v58 = vld [vmem:[#allocation7 + $0xa0] sm:$0xff] }
  0x9d   :  { %412 = vmatpush2.msra.mxu1 %v325_v23  ;;  %533 = vmatpush1.msra.mxu0 %v438_v59  ;;  %v474_v23 = vld [vmem:[#allocation6 + $0x150] sm:$0xff]  ;;  %v600_v59 = vld [vmem:[#allocation7 + $0x98] sm:$0xff] }
  0x9e   :  { %413 = vmatprep.subr.mxu1 %v324_v24  ;;  %534 = vmatprep.subr.mxu0 %v437_v60  ;;  %v473_v24 = vld [vmem:[#allocation6 + $0x148] sm:$0xff]  ;;  %v599_v60 = vld [vmem:[#allocation7 + $0x90] sm:$0xff] }
  0x9f   :  { %414 = vmatpush2.msra.mxu1 %v323_v25  ;;  %535 = vmatpush1.msra.mxu0 %v436_v61  ;;  %v472_v25 = vld [vmem:[#allocation6 + $0x140] sm:$0xff]  ;;  %v598_v61 = vld [vmem:[#allocation7 + $0x88] sm:$0xff] }
  0xa0   :  { %415 = vmatprep.subr.mxu1 %v322_v26  ;;  %536 = vmatprep.subr.mxu0 %v435_v62  ;;  %v200_v26 = vlaneseq  ;;  %v597_v62 = vld [vmem:[#allocation7 + $0x80] sm:$0xff] }
  0xa1   :  { %416 = vmatpush2.msra.mxu1 %v321_v27  ;;  %537 = vmatpush1.msra.mxu0 %v434_v63  ;;  %v596_v63 = vld [vmem:[#allocation7 + $0x78] sm:$0xff] }
  0xa2   :  { %417 = vmatprep.subr.mxu1 %v320_v28  ;;  %538 = vmatprep.subr.mxu0 %v433_v0  ;;  %v1723_v27 = vshrl.u32 %v200_v26, 7  ;;  %v595_v0 = vld [vmem:[#allocation7 + $0x70] sm:$0xff]  ;;  %v633_v26 = vld [vmem:[#allocation7 + $0x1a0] sm:$0xff] }
  0xa3   :  { %418 = vmatpush2.msra.mxu1 %v319_v29  ;;  %539 = vmatpush1.msra.mxu0 %v432_v1  ;;  %v198_v29 = vld [vmem:[%s1780_s2] sm:$0x3]  ;;  %v594_v1 = vld [vmem:[#allocation7 + $0x68] sm:$0xff] }
  0xa4   :  { %419 = vmatprep.subr.mxu1 %v318_v30  ;;  %540 = vmatprep.subr.mxu0 %v495_v2  ;;  %v1726_v28 = vsub.s32 0, %v1723_v27  ;;  %v1732_v30 = vsub.s32 1, %v1723_v27  ;;  %v593_v2 = vld [vmem:[#allocation7 + $0x60] sm:$0xff]  ;;  %vm1331_vm0 = vcmp.lt.s32.totalorder %v1723_v27, 2 }
  0xa5   :  { %420 = vmatpush2.msra.mxu1 %v317_v31  ;;  %541 = vmatpush2.msra.mxu0 %v494_v3  ;;  %v592_v3 = vld [vmem:[#allocation7 + $0x58] sm:$0xff] }
  0xa6   :  { %421 = vmatprep.subr.mxu1 %v316_v32  ;;  %542 = vmatprep.subr.mxu0 %v493_v4  ;;  %v203_v31 = vrot.slane %v198_v29, %v1726_v28  ;;  %v207_v32 = vrot.slane %v198_v29, %v1732_v30  ;;  %v591_v4 = vld [vmem:[#allocation7 + $0x50] sm:$0xff]  ;;  %v632_v29 = vld [vmem:[#allocation7 + $0x198] sm:$0xff] }
  0xa7   :  { %422 = vmatpush2.msra.mxu1 %v315_v33  ;;  %543 = vmatpush2.msra.mxu0 %v492_v5  ;;  %v590_v5 = vld [vmem:[#allocation7 + $0x48] sm:$0xff] }
  0xa8   :  { %544 = vmatprep.subr.mxu0 %v491_v6  ;;  %657 = vmatprep.subr.mxu1 %v612_v47  ;;  %v589_v6 = vld [vmem:[#allocation7 + $0x40] sm:$0xff] }
  0xa9   :  { %545 = vmatpush2.msra.mxu0 %v490_v7  ;;  %v588_v7 = vld [vmem:[#allocation7 + $0x38] sm:$0xff] }
  0xaa   :  { %546 = vmatprep.subr.mxu0 %v489_v8  ;;  %v587_v8 = vld [vmem:[#allocation7 + $0x30] sm:$0xff] }
  0xab   :  { %547 = vmatpush2.msra.mxu0 %v488_v9  ;;  %v586_v9 = vld [vmem:[#allocation7 + $0x28] sm:$0xff] }
  0xac   :  { %548 = vmatprep.subr.mxu0 %v487_v10  ;;  %v585_v10 = vld [vmem:[#allocation7 + $0x20] sm:$0xff] }
  0xad   :  { %549 = vmatpush2.msra.mxu0 %v486_v11  ;;  %v584_v11 = vld [vmem:[#allocation7 + $0x18] sm:$0xff] }
  0xae   :  { %550 = vmatprep.subr.mxu0 %v485_v12  ;;  %v583_v12 = vld [vmem:[#allocation7 + $0x10] sm:$0xff] }
  0xaf   :  { %551 = vmatpush2.msra.mxu0 %v484_v13  ;;  %v582_v13 = vld [vmem:[#allocation7 + $0x8] sm:$0xff] }
  0xb0   :  { %552 = vmatprep.subr.mxu0 %v483_v14  ;;  %v581_v14 = vld [vmem:[#allocation7] sm:$0xff] }
  0xb1   :  { %553 = vmatpush2.msra.mxu0 %v482_v15  ;;  %v644_v15 = vld [vmem:[#allocation7 + $0x1f8] sm:$0xff] }
  0xb2   :  { %554 = vmatprep.subr.mxu0 %v481_v16  ;;  %v643_v16 = vld [vmem:[#allocation7 + $0x1f0] sm:$0xff] }
  0xb3   :  { %555 = vmatpush2.msra.mxu0 %v480_v17  ;;  %v642_v17 = vld [vmem:[#allocation7 + $0x1e8] sm:$0xff] }
  0xb4   :  { %556 = vmatprep.subr.mxu0 %v479_v18  ;;  %v641_v18 = vld [vmem:[#allocation7 + $0x1e0] sm:$0xff] }
  0xb5   :  { %557 = vmatpush2.msra.mxu0 %v478_v19  ;;  %v640_v19 = vld [vmem:[#allocation7 + $0x1d8] sm:$0xff] }
  0xb6   :  { %558 = vmatprep.subr.mxu0 %v477_v20  ;;  %v639_v20 = vld [vmem:[#allocation7 + $0x1d0] sm:$0xff] }
  0xb7   :  { %559 = vmatpush2.msra.mxu0 %v476_v21  ;;  %v638_v21 = vld [vmem:[#allocation7 + $0x1c8] sm:$0xff] }
  0xb8   :  { %560 = vmatprep.subr.mxu0 %v475_v22  ;;  %v637_v22 = vld [vmem:[#allocation7 + $0x1c0] sm:$0xff] }
  0xb9   :  { %561 = vmatpush2.msra.mxu0 %v474_v23  ;;  %v636_v23 = vld [vmem:[#allocation7 + $0x1b8] sm:$0xff] }
  0xba   :  { %562 = vmatprep.subr.mxu0 %v473_v24  ;;  %v635_v24 = vld [vmem:[#allocation7 + $0x1b0] sm:$0xff] }
  0xbb   :  { %563 = vmatpush2.msra.mxu0 %v472_v25  ;;  %v634_v25 = vld [vmem:[#allocation7 + $0x1a8] sm:$0xff] }
  0xbc   :  { %564 = vmatprep.subr.mxu0 %v471_v39  ;;  %v623_v39 = vld [vmem:[#allocation7 + $0x150] sm:$0xff] }
  0xbd   :  { %565 = vmatpush2.msra.mxu0 %v470_v40  ;;  %v622_v40 = vld [vmem:[#allocation7 + $0x148] sm:$0xff] }
  0xbe   :  { %566 = vmatprep.subr.mxu0 %v469_v41  ;;  %v621_v41 = vld [vmem:[#allocation7 + $0x140] sm:$0xff] }
  0xbf   :  { %567 = vmatpush2.msra.mxu0 %v468_v42  ;;  %v347_v42 = vld [vmem:[%s1782_s4] sm:$0x3] }
  0xc0   :  { %568 = vmatprep.subr.mxu0 %v467_v43  ;;  %v352_v43 = vrot.slane %v347_v42, %v1726_v28 }
  0xc1   :  { %569 = vmatpush2.msra.mxu0 %v466_v44  ;;  %v356_v44 = vrot.slane %v347_v42, %v1732_v30  ;;  %v781_v42 = vld [vmem:[#allocation9 + $0x198] sm:$0xff] }
  0xc2   :  { %570 = vmatprep.subr.mxu0 %v465_v45 }
  0xc3   :  { %571 = vmatpush2.msra.mxu0 %v464_v46 }
 0x143   :  { %v276_v33 = vpop.f32.mrf.mxu0 }
 0x144   :  { %v277_v34 = vadd.f32 %v276_v33, %v203_v31  ;;  %v631_v31 = vld [vmem:[#allocation7 + $0x190] sm:$0xff]  ;;  %v629_v33 = vld [vmem:[#allocation7 + $0x180] sm:$0xff] }
 0x145   :  { %v278_v35 = vpop.f32.mrf.mxu0 }
 0x146   :  { %v279_v36 = vadd.f32 %v278_v35, %v207_v32  ;;  %v281_v38 = vmax.f32 %v277_v34, 0.0  ;;  %v630_v32 = vld [vmem:[#allocation7 + $0x188] sm:$0xff]  ;;  %v628_v34 = vld [vmem:[#allocation7 + $0x178] sm:$0xff]  ;;  %v627_v35 = vld [vmem:[#allocation7 + $0x170] sm:$0xff] }
 0x148   :  { %v282_v37 = vmax.f32 %v279_v36, 0.0  ;;  %v626_v36 = vld [vmem:[#allocation7 + $0x168] sm:$0xff] }
 0x14a   :  { %423 = vmatprep.mubr.f32.mxu1 %v282_v37  ;;  %v625_v37 = vld [vmem:[#allocation7 + $0x160] sm:$0xff] }
 0x14b   :  { %424 = vmatmul.mubr.f32.vlgmr.msra.gmra.mxu1 %v281_v38  ;;  %v624_v38 = vld [vmem:[#allocation7 + $0x158] sm:$0xff] }
 0x14c   :  { %658 = vmatpush1.msra.mxu1 %v611_v48 }
 0x14d   :  { %659 = vmatprep.subr.mxu1 %v610_v49 }
 0x14e   :  { %660 = vmatpush1.msra.mxu1 %v609_v50 }
 0x14f   :  { %661 = vmatprep.subr.mxu1 %v608_v51  ;;  %v620_v51 = vld [vmem:[#allocation7 + $0x138] sm:$0xff] }
 0x150   :  { %662 = vmatpush1.msra.mxu1 %v607_v52  ;;  %v619_v52 = vld [vmem:[#allocation7 + $0x130] sm:$0xff] }
 0x151   :  { %663 = vmatprep.subr.mxu1 %v606_v53  ;;  %v618_v53 = vld [vmem:[#allocation7 + $0x128] sm:$0xff] }
 0x152   :  { %664 = vmatpush1.msra.mxu1 %v605_v54  ;;  %v617_v54 = vld [vmem:[#allocation7 + $0x120] sm:$0xff] }
 0x153   :  { %665 = vmatprep.subr.mxu1 %v604_v55  ;;  %v616_v55 = vld [vmem:[#allocation7 + $0x118] sm:$0xff] }
 0x154   :  { %666 = vmatpush1.msra.mxu1 %v603_v56  ;;  %v615_v56 = vld [vmem:[#allocation7 + $0x110] sm:$0xff] }
 0x155   :  { %667 = vmatprep.subr.mxu1 %v602_v57  ;;  %v614_v57 = vld [vmem:[#allocation7 + $0x108] sm:$0xff] }
 0x156   :  { %668 = vmatpush1.msra.mxu1 %v601_v58  ;;  %v613_v58 = vld [vmem:[#allocation7 + $0x100] sm:$0xff] }
 0x157   :  { %669 = vmatprep.subr.mxu1 %v600_v59  ;;  %v761_v59 = vld [vmem:[#allocation9 + $0xf8] sm:$0xff] }
 0x158   :  { %670 = vmatpush1.msra.mxu1 %v599_v60  ;;  %v760_v60 = vld [vmem:[#allocation9 + $0xf0] sm:$0xff]  ;;  %806 = vmatprep.subr.mxu0 %v761_v59 }
 0x159   :  { %671 = vmatprep.subr.mxu1 %v598_v61  ;;  %v759_v61 = vld [vmem:[#allocation9 + $0xe8] sm:$0xff] }
 0x15a   :  { %672 = vmatpush1.msra.mxu1 %v597_v62  ;;  %v758_v62 = vld [vmem:[#allocation9 + $0xe0] sm:$0xff] }
 0x15b   :  { %673 = vmatprep.subr.mxu1 %v596_v63  ;;  %v757_v63 = vld [vmem:[#allocation9 + $0xd8] sm:$0xff] }
 0x15c   :  { %674 = vmatpush1.msra.mxu1 %v595_v0  ;;  %v756_v0 = vld [vmem:[#allocation9 + $0xd0] sm:$0xff] }
 0x15d   :  { %675 = vmatprep.subr.mxu1 %v594_v1  ;;  %v755_v1 = vld [vmem:[#allocation9 + $0xc8] sm:$0xff] }
 0x15e   :  { %676 = vmatpush1.msra.mxu1 %v593_v2  ;;  %v754_v2 = vld [vmem:[#allocation9 + $0xc0] sm:$0xff] }
 0x15f   :  { %677 = vmatprep.subr.mxu1 %v592_v3  ;;  %v753_v3 = vld [vmem:[#allocation9 + $0xb8] sm:$0xff] }
 0x160   :  { %678 = vmatpush1.msra.mxu1 %v591_v4  ;;  %v752_v4 = vld [vmem:[#allocation9 + $0xb0] sm:$0xff] }
 0x161   :  { %679 = vmatprep.subr.mxu1 %v590_v5  ;;  %v751_v5 = vld [vmem:[#allocation9 + $0xa8] sm:$0xff] }
 0x162   :  { %680 = vmatpush1.msra.mxu1 %v589_v6  ;;  %v750_v6 = vld [vmem:[#allocation9 + $0xa0] sm:$0xff] }
 0x163   :  { %681 = vmatprep.subr.mxu1 %v588_v7  ;;  %v749_v7 = vld [vmem:[#allocation9 + $0x98] sm:$0xff] }
 0x164   :  { %682 = vmatpush1.msra.mxu1 %v587_v8  ;;  %v748_v8 = vld [vmem:[#allocation9 + $0x90] sm:$0xff] }
 0x165   :  { %683 = vmatprep.subr.mxu1 %v586_v9  ;;  %v747_v9 = vld [vmem:[#allocation9 + $0x88] sm:$0xff] }
 0x166   :  { %684 = vmatpush1.msra.mxu1 %v585_v10  ;;  %v746_v10 = vld [vmem:[#allocation9 + $0x80] sm:$0xff] }
 0x167   :  { %685 = vmatprep.subr.mxu1 %v584_v11  ;;  %v745_v11 = vld [vmem:[#allocation9 + $0x78] sm:$0xff] }
 0x168   :  { %686 = vmatpush1.msra.mxu1 %v583_v12  ;;  %v744_v12 = vld [vmem:[#allocation9 + $0x70] sm:$0xff] }
 0x169   :  { %687 = vmatprep.subr.mxu1 %v582_v13  ;;  %v743_v13 = vld [vmem:[#allocation9 + $0x68] sm:$0xff] }
 0x16a   :  { %688 = vmatpush1.msra.mxu1 %v581_v14  ;;  %v742_v14 = vld [vmem:[#allocation9 + $0x60] sm:$0xff] }
 0x16b   :  { %689 = vmatprep.subr.mxu1 %v644_v15  ;;  %v741_v15 = vld [vmem:[#allocation9 + $0x58] sm:$0xff] }
 0x16c   :  { %690 = vmatpush2.msra.mxu1 %v643_v16  ;;  %v740_v16 = vld [vmem:[#allocation9 + $0x50] sm:$0xff] }
 0x16d   :  { %691 = vmatprep.subr.mxu1 %v642_v17  ;;  %v739_v17 = vld [vmem:[#allocation9 + $0x48] sm:$0xff] }
 0x16e   :  { %692 = vmatpush2.msra.mxu1 %v641_v18  ;;  %v738_v18 = vld [vmem:[#allocation9 + $0x40] sm:$0xff] }
 0x16f   :  { %693 = vmatprep.subr.mxu1 %v640_v19  ;;  %v737_v19 = vld [vmem:[#allocation9 + $0x38] sm:$0xff] }
 0x170   :  { %694 = vmatpush2.msra.mxu1 %v639_v20  ;;  %v736_v20 = vld [vmem:[#allocation9 + $0x30] sm:$0xff] }
 0x171   :  { %695 = vmatprep.subr.mxu1 %v638_v21  ;;  %v735_v21 = vld [vmem:[#allocation9 + $0x28] sm:$0xff] }
 0x172   :  { %696 = vmatpush2.msra.mxu1 %v637_v22  ;;  %v734_v22 = vld [vmem:[#allocation9 + $0x20] sm:$0xff] }
 0x173   :  { %697 = vmatprep.subr.mxu1 %v636_v23  ;;  %v733_v23 = vld [vmem:[#allocation9 + $0x18] sm:$0xff] }
 0x174   :  { %698 = vmatpush2.msra.mxu1 %v635_v24  ;;  %v732_v24 = vld [vmem:[#allocation9 + $0x10] sm:$0xff] }
 0x175   :  { %699 = vmatprep.subr.mxu1 %v634_v25  ;;  %v731_v25 = vld [vmem:[#allocation9 + $0x8] sm:$0xff] }
 0x176   :  { %700 = vmatpush2.msra.mxu1 %v633_v26  ;;  %v730_v26 = vld [vmem:[#allocation9] sm:$0xff] }
 0x177   :  { %701 = vmatprep.subr.mxu1 %v632_v29  ;;  %v793_v29 = vld [vmem:[#allocation9 + $0x1f8] sm:$0xff] }
 0x178   :  { %702 = vmatpush2.msra.mxu1 %v631_v31  ;;  %v792_v31 = vld [vmem:[#allocation9 + $0x1f0] sm:$0xff] }
 0x179   :  { %703 = vmatprep.subr.mxu1 %v630_v32  ;;  %v791_v32 = vld [vmem:[#allocation9 + $0x1e8] sm:$0xff] }
 0x17a   :  { %704 = vmatpush2.msra.mxu1 %v629_v33  ;;  %v790_v33 = vld [vmem:[#allocation9 + $0x1e0] sm:$0xff] }
 0x17b   :  { %705 = vmatprep.subr.mxu1 %v628_v34  ;;  %v789_v34 = vld [vmem:[#allocation9 + $0x1d8] sm:$0xff] }
 0x17c   :  { %706 = vmatpush2.msra.mxu1 %v627_v35  ;;  %v788_v35 = vld [vmem:[#allocation9 + $0x1d0] sm:$0xff] }
 0x17d   :  { %707 = vmatprep.subr.mxu1 %v626_v36  ;;  %v787_v36 = vld [vmem:[#allocation9 + $0x1c8] sm:$0xff] }
 0x17e   :  { %708 = vmatpush2.msra.mxu1 %v625_v37  ;;  %v786_v37 = vld [vmem:[#allocation9 + $0x1c0] sm:$0xff] }
 0x17f   :  { %709 = vmatprep.subr.mxu1 %v624_v38  ;;  %v785_v38 = vld [vmem:[#allocation9 + $0x1b8] sm:$0xff] }
 0x180   :  { %710 = vmatpush2.msra.mxu1 %v623_v39  ;;  %v784_v39 = vld [vmem:[#allocation9 + $0x1b0] sm:$0xff] }
 0x181   :  { %711 = vmatprep.subr.mxu1 %v622_v40  ;;  %v783_v40 = vld [vmem:[#allocation9 + $0x1a8] sm:$0xff] }
 0x182   :  { %712 = vmatpush2.msra.mxu1 %v621_v41  ;;  %v782_v41 = vld [vmem:[#allocation9 + $0x1a0] sm:$0xff] }
 0x183   :  { %713 = vmatprep.subr.mxu1 %v620_v51  ;;  %v772_v51 = vld [vmem:[#allocation9 + $0x150] sm:$0xff] }
 0x184   :  { %714 = vmatpush2.msra.mxu1 %v619_v52  ;;  %v771_v52 = vld [vmem:[#allocation9 + $0x148] sm:$0xff] }
 0x185   :  { %715 = vmatprep.subr.mxu1 %v618_v53  ;;  %v770_v53 = vld [vmem:[#allocation9 + $0x140] sm:$0xff] }
 0x186   :  { %716 = vmatpush2.msra.mxu1 %v617_v54  ;;  %v496_v54 = vld [vmem:[%s1784_s6] sm:$0x3] }
 0x187   :  { %717 = vmatprep.subr.mxu1 %v616_v55  ;;  %v501_v55 = vrot.slane %v496_v54, %v1726_v28 }
 0x188   :  { %718 = vmatpush2.msra.mxu1 %v615_v56  ;;  %v505_v56 = vrot.slane %v496_v54, %v1732_v30  ;;  %v930_v54 = vld [vmem:[#allocation10 + $0x198] sm:$0xff] }
 0x189   :  { %719 = vmatprep.subr.mxu1 %v614_v57 }
 0x18a   :  { %720 = vmatpush2.msra.mxu1 %v613_v58 }
 0x20b   :  { %v425_v45 = vpop.f32.mrf.mxu1 }
 0x20c   :  { %v426_v46 = vadd.f32 %v425_v45, %v352_v43  ;;  %v780_v43 = vld [vmem:[#allocation9 + $0x190] sm:$0xff]  ;;  %v778_v45 = vld [vmem:[#allocation9 + $0x180] sm:$0xff] }
 0x20d   :  { %v427_v47 = vpop.f32.mrf.mxu1 }
 0x20e   :  { %v428_v48 = vadd.f32 %v427_v47, %v356_v44  ;;  %v430_v50 = vmax.f32 %v426_v46, 0.0  ;;  %v779_v44 = vld [vmem:[#allocation9 + $0x188] sm:$0xff]  ;;  %v777_v46 = vld [vmem:[#allocation9 + $0x178] sm:$0xff]  ;;  %v776_v47 = vld [vmem:[#allocation9 + $0x170] sm:$0xff] }
 0x210   :  { %v431_v49 = vmax.f32 %v428_v48, 0.0  ;;  %v775_v48 = vld [vmem:[#allocation9 + $0x168] sm:$0xff] }
 0x212   :  { %572 = vmatprep.mubr.f32.mxu0 %v431_v49  ;;  %v774_v49 = vld [vmem:[#allocation9 + $0x160] sm:$0xff] }
 0x213   :  { %573 = vmatmul.mubr.f32.vlgmr.msra.gmra.mxu0 %v430_v50  ;;  %v773_v50 = vld [vmem:[#allocation9 + $0x158] sm:$0xff] }
 0x214   :  { %807 = vmatpush1.msra.mxu0 %v760_v60 }
 0x215   :  { %808 = vmatprep.subr.mxu0 %v759_v61 }
 0x216   :  { %809 = vmatpush1.msra.mxu0 %v758_v62 }
 0x217   :  { %810 = vmatprep.subr.mxu0 %v757_v63  ;;  %v769_v63 = vld [vmem:[#allocation9 + $0x138] sm:$0xff] }
 0x218   :  { %811 = vmatpush1.msra.mxu0 %v756_v0  ;;  %v768_v0 = vld [vmem:[#allocation9 + $0x130] sm:$0xff] }
 0x219   :  { %812 = vmatprep.subr.mxu0 %v755_v1  ;;  %v767_v1 = vld [vmem:[#allocation9 + $0x128] sm:$0xff] }
 0x21a   :  { %813 = vmatpush1.msra.mxu0 %v754_v2  ;;  %v766_v2 = vld [vmem:[#allocation9 + $0x120] sm:$0xff] }
 0x21b   :  { %814 = vmatprep.subr.mxu0 %v753_v3  ;;  %v765_v3 = vld [vmem:[#allocation9 + $0x118] sm:$0xff] }
 0x21c   :  { %815 = vmatpush1.msra.mxu0 %v752_v4  ;;  %v764_v4 = vld [vmem:[#allocation9 + $0x110] sm:$0xff] }
 0x21d   :  { %816 = vmatprep.subr.mxu0 %v751_v5  ;;  %v763_v5 = vld [vmem:[#allocation9 + $0x108] sm:$0xff] }
 0x21e   :  { %817 = vmatpush1.msra.mxu0 %v750_v6  ;;  %v762_v6 = vld [vmem:[#allocation9 + $0x100] sm:$0xff] }
 0x21f   :  { %818 = vmatprep.subr.mxu0 %v749_v7  ;;  %v910_v7 = vld [vmem:[#allocation10 + $0xf8] sm:$0xff] }
 0x220   :  { %819 = vmatpush1.msra.mxu0 %v748_v8  ;;  %v909_v8 = vld [vmem:[#allocation10 + $0xf0] sm:$0xff]  ;;  %955 = vmatprep.subr.mxu1 %v910_v7 }
 0x221   :  { %820 = vmatprep.subr.mxu0 %v747_v9  ;;  %v908_v9 = vld [vmem:[#allocation10 + $0xe8] sm:$0xff] }
 0x222   :  { %821 = vmatpush1.msra.mxu0 %v746_v10  ;;  %v907_v10 = vld [vmem:[#allocation10 + $0xe0] sm:$0xff] }
 0x223   :  { %822 = vmatprep.subr.mxu0 %v745_v11  ;;  %v906_v11 = vld [vmem:[#allocation10 + $0xd8] sm:$0xff] }
 0x224   :  { %823 = vmatpush1.msra.mxu0 %v744_v12  ;;  %v905_v12 = vld [vmem:[#allocation10 + $0xd0] sm:$0xff] }
 0x225   :  { %824 = vmatprep.subr.mxu0 %v743_v13  ;;  %v904_v13 = vld [vmem:[#allocation10 + $0xc8] sm:$0xff] }
 0x226   :  { %825 = vmatpush1.msra.mxu0 %v742_v14  ;;  %v903_v14 = vld [vmem:[#allocation10 + $0xc0] sm:$0xff] }
 0x227   :  { %826 = vmatprep.subr.mxu0 %v741_v15  ;;  %v902_v15 = vld [vmem:[#allocation10 + $0xb8] sm:$0xff] }
 0x228   :  { %827 = vmatpush1.msra.mxu0 %v740_v16  ;;  %v901_v16 = vld [vmem:[#allocation10 + $0xb0] sm:$0xff] }
 0x229   :  { %828 = vmatprep.subr.mxu0 %v739_v17  ;;  %v900_v17 = vld [vmem:[#allocation10 + $0xa8] sm:$0xff] }
 0x22a   :  { %829 = vmatpush1.msra.mxu0 %v738_v18  ;;  %v899_v18 = vld [vmem:[#allocation10 + $0xa0] sm:$0xff] }
 0x22b   :  { %830 = vmatprep.subr.mxu0 %v737_v19  ;;  %v898_v19 = vld [vmem:[#allocation10 + $0x98] sm:$0xff] }
 0x22c   :  { %831 = vmatpush1.msra.mxu0 %v736_v20  ;;  %v897_v20 = vld [vmem:[#allocation10 + $0x90] sm:$0xff] }
 0x22d   :  { %832 = vmatprep.subr.mxu0 %v735_v21  ;;  %v896_v21 = vld [vmem:[#allocation10 + $0x88] sm:$0xff] }
 0x22e   :  { %833 = vmatpush1.msra.mxu0 %v734_v22  ;;  %v895_v22 = vld [vmem:[#allocation10 + $0x80] sm:$0xff] }
 0x22f   :  { %834 = vmatprep.subr.mxu0 %v733_v23  ;;  %v894_v23 = vld [vmem:[#allocation10 + $0x78] sm:$0xff] }
 0x230   :  { %835 = vmatpush1.msra.mxu0 %v732_v24  ;;  %v893_v24 = vld [vmem:[#allocation10 + $0x70] sm:$0xff] }
 0x231   :  { %836 = vmatprep.subr.mxu0 %v731_v25  ;;  %v892_v25 = vld [vmem:[#allocation10 + $0x68] sm:$0xff] }
 0x232   :  { %837 = vmatpush1.msra.mxu0 %v730_v26  ;;  %v891_v26 = vld [vmem:[#allocation10 + $0x60] sm:$0xff] }
 0x233   :  { %838 = vmatprep.subr.mxu0 %v793_v29  ;;  %v890_v29 = vld [vmem:[#allocation10 + $0x58] sm:$0xff] }
 0x234   :  { %839 = vmatpush2.msra.mxu0 %v792_v31  ;;  %v889_v31 = vld [vmem:[#allocation10 + $0x50] sm:$0xff] }
 0x235   :  { %840 = vmatprep.subr.mxu0 %v791_v32  ;;  %v888_v32 = vld [vmem:[#allocation10 + $0x48] sm:$0xff] }
 0x236   :  { %841 = vmatpush2.msra.mxu0 %v790_v33  ;;  %v887_v33 = vld [vmem:[#allocation10 + $0x40] sm:$0xff] }
 0x237   :  { %842 = vmatprep.subr.mxu0 %v789_v34  ;;  %v886_v34 = vld [vmem:[#allocation10 + $0x38] sm:$0xff] }
 0x238   :  { %843 = vmatpush2.msra.mxu0 %v788_v35  ;;  %v885_v35 = vld [vmem:[#allocation10 + $0x30] sm:$0xff] }
 0x239   :  { %844 = vmatprep.subr.mxu0 %v787_v36  ;;  %v884_v36 = vld [vmem:[#allocation10 + $0x28] sm:$0xff] }
 0x23a   :  { %845 = vmatpush2.msra.mxu0 %v786_v37  ;;  %v883_v37 = vld [vmem:[#allocation10 + $0x20] sm:$0xff] }
 0x23b   :  { %846 = vmatprep.subr.mxu0 %v785_v38  ;;  %v882_v38 = vld [vmem:[#allocation10 + $0x18] sm:$0xff] }
 0x23c   :  { %847 = vmatpush2.msra.mxu0 %v784_v39  ;;  %v881_v39 = vld [vmem:[#allocation10 + $0x10] sm:$0xff] }
 0x23d   :  { %848 = vmatprep.subr.mxu0 %v783_v40  ;;  %v880_v40 = vld [vmem:[#allocation10 + $0x8] sm:$0xff] }
 0x23e   :  { %849 = vmatpush2.msra.mxu0 %v782_v41  ;;  %v879_v41 = vld [vmem:[#allocation10] sm:$0xff] }
 0x23f   :  { %850 = vmatprep.subr.mxu0 %v781_v42  ;;  %v942_v42 = vld [vmem:[#allocation10 + $0x1f8] sm:$0xff] }
 0x240   :  { %851 = vmatpush2.msra.mxu0 %v780_v43  ;;  %v941_v43 = vld [vmem:[#allocation10 + $0x1f0] sm:$0xff] }
 0x241   :  { %852 = vmatprep.subr.mxu0 %v779_v44  ;;  %v940_v44 = vld [vmem:[#allocation10 + $0x1e8] sm:$0xff] }
 0x242   :  { %853 = vmatpush2.msra.mxu0 %v778_v45  ;;  %v939_v45 = vld [vmem:[#allocation10 + $0x1e0] sm:$0xff] }
 0x243   :  { %854 = vmatprep.subr.mxu0 %v777_v46  ;;  %v938_v46 = vld [vmem:[#allocation10 + $0x1d8] sm:$0xff] }
 0x244   :  { %855 = vmatpush2.msra.mxu0 %v776_v47  ;;  %v937_v47 = vld [vmem:[#allocation10 + $0x1d0] sm:$0xff] }
 0x245   :  { %856 = vmatprep.subr.mxu0 %v775_v48  ;;  %v936_v48 = vld [vmem:[#allocation10 + $0x1c8] sm:$0xff] }
 0x246   :  { %857 = vmatpush2.msra.mxu0 %v774_v49  ;;  %v935_v49 = vld [vmem:[#allocation10 + $0x1c0] sm:$0xff] }
 0x247   :  { %858 = vmatprep.subr.mxu0 %v773_v50  ;;  %v934_v50 = vld [vmem:[#allocation10 + $0x1b8] sm:$0xff] }
 0x248   :  { %859 = vmatpush2.msra.mxu0 %v772_v51  ;;  %v933_v51 = vld [vmem:[#allocation10 + $0x1b0] sm:$0xff] }
 0x249   :  { %860 = vmatprep.subr.mxu0 %v771_v52  ;;  %v932_v52 = vld [vmem:[#allocation10 + $0x1a8] sm:$0xff] }
 0x24a   :  { %861 = vmatpush2.msra.mxu0 %v770_v53  ;;  %v931_v53 = vld [vmem:[#allocation10 + $0x1a0] sm:$0xff] }
 0x24b   :  { %862 = vmatprep.subr.mxu0 %v769_v63  ;;  %v921_v63 = vld [vmem:[#allocation10 + $0x150] sm:$0xff] }
 0x24c   :  { %863 = vmatpush2.msra.mxu0 %v768_v0  ;;  %v920_v0 = vld [vmem:[#allocation10 + $0x148] sm:$0xff] }
 0x24d   :  { %864 = vmatprep.subr.mxu0 %v767_v1  ;;  %v919_v1 = vld [vmem:[#allocation10 + $0x140] sm:$0xff] }
 0x24e   :  { %865 = vmatpush2.msra.mxu0 %v766_v2  ;;  %v645_v2 = vld [vmem:[%s1786_s8] sm:$0x3] }
 0x24f   :  { %866 = vmatprep.subr.mxu0 %v765_v3  ;;  %v650_v3 = vrot.slane %v645_v2, %v1726_v28 }
 0x250   :  { %867 = vmatpush2.msra.mxu0 %v764_v4  ;;  %v654_v4 = vrot.slane %v645_v2, %v1732_v30  ;;  %v1079_v2 = vld [vmem:[#allocation12 + $0x198] sm:$0xff] }
 0x251   :  { %868 = vmatprep.subr.mxu0 %v763_v5 }
 0x252   :  { %869 = vmatpush2.msra.mxu0 %v762_v6 }
 0x2d3   :  { %v574_v57 = vpop.f32.mrf.mxu0 }
 0x2d4   :  { %v575_v58 = vadd.f32 %v574_v57, %v501_v55  ;;  %v929_v55 = vld [vmem:[#allocation10 + $0x190] sm:$0xff]  ;;  %v927_v57 = vld [vmem:[#allocation10 + $0x180] sm:$0xff] }
 0x2d5   :  { %v576_v59 = vpop.f32.mrf.mxu0 }
 0x2d6   :  { %v577_v60 = vadd.f32 %v576_v59, %v505_v56  ;;  %v579_v62 = vmax.f32 %v575_v58, 0.0  ;;  %v928_v56 = vld [vmem:[#allocation10 + $0x188] sm:$0xff]  ;;  %v926_v58 = vld [vmem:[#allocation10 + $0x178] sm:$0xff]  ;;  %v925_v59 = vld [vmem:[#allocation10 + $0x170] sm:$0xff] }
 0x2d8   :  { %v580_v61 = vmax.f32 %v577_v60, 0.0  ;;  %v924_v60 = vld [vmem:[#allocation10 + $0x168] sm:$0xff] }
 0x2da   :  { %721 = vmatprep.mubr.f32.mxu1 %v580_v61  ;;  %v923_v61 = vld [vmem:[#allocation10 + $0x160] sm:$0xff] }
 0x2db   :  { %722 = vmatmul.mubr.f32.vlgmr.msra.gmra.mxu1 %v579_v62  ;;  %v922_v62 = vld [vmem:[#allocation10 + $0x158] sm:$0xff] }
 0x2dc   :  { %956 = vmatpush1.msra.mxu1 %v909_v8 }
 0x2dd   :  { %957 = vmatprep.subr.mxu1 %v908_v9 }
 0x2de   :  { %958 = vmatpush1.msra.mxu1 %v907_v10 }
 0x2df   :  { %959 = vmatprep.subr.mxu1 %v906_v11  ;;  %v918_v11 = vld [vmem:[#allocation10 + $0x138] sm:$0xff] }
 0x2e0   :  { %960 = vmatpush1.msra.mxu1 %v905_v12  ;;  %v917_v12 = vld [vmem:[#allocation10 + $0x130] sm:$0xff] }
 0x2e1   :  { %961 = vmatprep.subr.mxu1 %v904_v13  ;;  %v916_v13 = vld [vmem:[#allocation10 + $0x128] sm:$0xff] }
 0x2e2   :  { %962 = vmatpush1.msra.mxu1 %v903_v14  ;;  %v915_v14 = vld [vmem:[#allocation10 + $0x120] sm:$0xff] }
 0x2e3   :  { %963 = vmatprep.subr.mxu1 %v902_v15  ;;  %v914_v15 = vld [vmem:[#allocation10 + $0x118] sm:$0xff] }
 0x2e4   :  { %964 = vmatpush1.msra.mxu1 %v901_v16  ;;  %v913_v16 = vld [vmem:[#allocation10 + $0x110] sm:$0xff] }
 0x2e5   :  { %965 = vmatprep.subr.mxu1 %v900_v17  ;;  %v912_v17 = vld [vmem:[#allocation10 + $0x108] sm:$0xff] }
 0x2e6   :  { %966 = vmatpush1.msra.mxu1 %v899_v18  ;;  %v911_v18 = vld [vmem:[#allocation10 + $0x100] sm:$0xff] }
 0x2e7   :  { %967 = vmatprep.subr.mxu1 %v898_v19  ;;  %v1059_v19 = vld [vmem:[#allocation12 + $0xf8] sm:$0xff] }
 0x2e8   :  { %968 = vmatpush1.msra.mxu1 %v897_v20  ;;  %v1058_v20 = vld [vmem:[#allocation12 + $0xf0] sm:$0xff]  ;;  %1104 = vmatprep.subr.mxu0 %v1059_v19 }
 0x2e9   :  { %969 = vmatprep.subr.mxu1 %v896_v21  ;;  %v1057_v21 = vld [vmem:[#allocation12 + $0xe8] sm:$0xff] }
 0x2ea   :  { %970 = vmatpush1.msra.mxu1 %v895_v22  ;;  %v1056_v22 = vld [vmem:[#allocation12 + $0xe0] sm:$0xff] }
 0x2eb   :  { %971 = vmatprep.subr.mxu1 %v894_v23  ;;  %v1055_v23 = vld [vmem:[#allocation12 + $0xd8] sm:$0xff] }
 0x2ec   :  { %972 = vmatpush1.msra.mxu1 %v893_v24  ;;  %v1054_v24 = vld [vmem:[#allocation12 + $0xd0] sm:$0xff] }
 0x2ed   :  { %973 = vmatprep.subr.mxu1 %v892_v25  ;;  %v1053_v25 = vld [vmem:[#allocation12 + $0xc8] sm:$0xff] }
 0x2ee   :  { %974 = vmatpush1.msra.mxu1 %v891_v26  ;;  %v1052_v26 = vld [vmem:[#allocation12 + $0xc0] sm:$0xff] }
 0x2ef   :  { %975 = vmatprep.subr.mxu1 %v890_v29  ;;  %v1051_v29 = vld [vmem:[#allocation12 + $0xb8] sm:$0xff] }
 0x2f0   :  { %976 = vmatpush1.msra.mxu1 %v889_v31  ;;  %v1050_v31 = vld [vmem:[#allocation12 + $0xb0] sm:$0xff] }
 0x2f1   :  { %977 = vmatprep.subr.mxu1 %v888_v32  ;;  %v1049_v32 = vld [vmem:[#allocation12 + $0xa8] sm:$0xff] }
 0x2f2   :  { %978 = vmatpush1.msra.mxu1 %v887_v33  ;;  %v1048_v33 = vld [vmem:[#allocation12 + $0xa0] sm:$0xff] }
 0x2f3   :  { %979 = vmatprep.subr.mxu1 %v886_v34  ;;  %v1047_v34 = vld [vmem:[#allocation12 + $0x98] sm:$0xff] }
 0x2f4   :  { %980 = vmatpush1.msra.mxu1 %v885_v35  ;;  %v1046_v35 = vld [vmem:[#allocation12 + $0x90] sm:$0xff] }
 0x2f5   :  { %981 = vmatprep.subr.mxu1 %v884_v36  ;;  %v1045_v36 = vld [vmem:[#allocation12 + $0x88] sm:$0xff] }
 0x2f6   :  { %982 = vmatpush1.msra.mxu1 %v883_v37  ;;  %v1044_v37 = vld [vmem:[#allocation12 + $0x80] sm:$0xff] }
 0x2f7   :  { %983 = vmatprep.subr.mxu1 %v882_v38  ;;  %v1043_v38 = vld [vmem:[#allocation12 + $0x78] sm:$0xff] }
 0x2f8   :  { %984 = vmatpush1.msra.mxu1 %v881_v39  ;;  %v1042_v39 = vld [vmem:[#allocation12 + $0x70] sm:$0xff] }
 0x2f9   :  { %985 = vmatprep.subr.mxu1 %v880_v40  ;;  %v1041_v40 = vld [vmem:[#allocation12 + $0x68] sm:$0xff] }
 0x2fa   :  { %986 = vmatpush1.msra.mxu1 %v879_v41  ;;  %v1040_v41 = vld [vmem:[#allocation12 + $0x60] sm:$0xff] }
 0x2fb   :  { %987 = vmatprep.subr.mxu1 %v942_v42  ;;  %v1039_v42 = vld [vmem:[#allocation12 + $0x58] sm:$0xff] }
 0x2fc   :  { %988 = vmatpush2.msra.mxu1 %v941_v43  ;;  %v1038_v43 = vld [vmem:[#allocation12 + $0x50] sm:$0xff] }
 0x2fd   :  { %989 = vmatprep.subr.mxu1 %v940_v44  ;;  %v1037_v44 = vld [vmem:[#allocation12 + $0x48] sm:$0xff] }
 0x2fe   :  { %990 = vmatpush2.msra.mxu1 %v939_v45  ;;  %v1036_v45 = vld [vmem:[#allocation12 + $0x40] sm:$0xff] }
 0x2ff   :  { %991 = vmatprep.subr.mxu1 %v938_v46  ;;  %v1035_v46 = vld [vmem:[#allocation12 + $0x38] sm:$0xff] }
 0x300   :  { %992 = vmatpush2.msra.mxu1 %v937_v47  ;;  %v1034_v47 = vld [vmem:[#allocation12 + $0x30] sm:$0xff] }
 0x301   :  { %993 = vmatprep.subr.mxu1 %v936_v48  ;;  %v1033_v48 = vld [vmem:[#allocation12 + $0x28] sm:$0xff] }
 0x302   :  { %994 = vmatpush2.msra.mxu1 %v935_v49  ;;  %v1032_v49 = vld [vmem:[#allocation12 + $0x20] sm:$0xff] }
 0x303   :  { %995 = vmatprep.subr.mxu1 %v934_v50  ;;  %v1031_v50 = vld [vmem:[#allocation12 + $0x18] sm:$0xff] }
 0x304   :  { %996 = vmatpush2.msra.mxu1 %v933_v51  ;;  %v1030_v51 = vld [vmem:[#allocation12 + $0x10] sm:$0xff] }
 0x305   :  { %997 = vmatprep.subr.mxu1 %v932_v52  ;;  %v1029_v52 = vld [vmem:[#allocation12 + $0x8] sm:$0xff] }
 0x306   :  { %998 = vmatpush2.msra.mxu1 %v931_v53  ;;  %v1028_v53 = vld [vmem:[#allocation12] sm:$0xff] }
 0x307   :  { %999 = vmatprep.subr.mxu1 %v930_v54  ;;  %v1091_v54 = vld [vmem:[#allocation12 + $0x1f8] sm:$0xff] }
 0x308   :  { %1000 = vmatpush2.msra.mxu1 %v929_v55  ;;  %v1090_v55 = vld [vmem:[#allocation12 + $0x1f0] sm:$0xff] }
 0x309   :  { %1001 = vmatprep.subr.mxu1 %v928_v56  ;;  %v1089_v56 = vld [vmem:[#allocation12 + $0x1e8] sm:$0xff] }
 0x30a   :  { %1002 = vmatpush2.msra.mxu1 %v927_v57  ;;  %v1088_v57 = vld [vmem:[#allocation12 + $0x1e0] sm:$0xff] }
 0x30b   :  { %1003 = vmatprep.subr.mxu1 %v926_v58  ;;  %v1087_v58 = vld [vmem:[#allocation12 + $0x1d8] sm:$0xff] }
 0x30c   :  { %1004 = vmatpush2.msra.mxu1 %v925_v59  ;;  %v1086_v59 = vld [vmem:[#allocation12 + $0x1d0] sm:$0xff] }
 0x30d   :  { %1005 = vmatprep.subr.mxu1 %v924_v60  ;;  %v1085_v60 = vld [vmem:[#allocation12 + $0x1c8] sm:$0xff] }
 0x30e   :  { %1006 = vmatpush2.msra.mxu1 %v923_v61  ;;  %v1084_v61 = vld [vmem:[#allocation12 + $0x1c0] sm:$0xff] }
 0x30f   :  { %1007 = vmatprep.subr.mxu1 %v922_v62  ;;  %v1083_v62 = vld [vmem:[#allocation12 + $0x1b8] sm:$0xff] }
 0x310   :  { %1008 = vmatpush2.msra.mxu1 %v921_v63  ;;  %v1082_v63 = vld [vmem:[#allocation12 + $0x1b0] sm:$0xff] }
 0x311   :  { %1009 = vmatprep.subr.mxu1 %v920_v0  ;;  %v1081_v0 = vld [vmem:[#allocation12 + $0x1a8] sm:$0xff] }
 0x312   :  { %1010 = vmatpush2.msra.mxu1 %v919_v1  ;;  %v1080_v1 = vld [vmem:[#allocation12 + $0x1a0] sm:$0xff] }
 0x313   :  { %1011 = vmatprep.subr.mxu1 %v918_v11  ;;  %v1070_v11 = vld [vmem:[#allocation12 + $0x150] sm:$0xff] }
 0x314   :  { %1012 = vmatpush2.msra.mxu1 %v917_v12  ;;  %v1069_v12 = vld [vmem:[#allocation12 + $0x148] sm:$0xff] }
 0x315   :  { %1013 = vmatprep.subr.mxu1 %v916_v13  ;;  %v1068_v13 = vld [vmem:[#allocation12 + $0x140] sm:$0xff] }
 0x316   :  { %1014 = vmatpush2.msra.mxu1 %v915_v14  ;;  %v794_v14 = vld [vmem:[%s1788_s10] sm:$0x3] }
 0x317   :  { %1015 = vmatprep.subr.mxu1 %v914_v15  ;;  %v799_v15 = vrot.slane %v794_v14, %v1726_v28 }
 0x318   :  { %1016 = vmatpush2.msra.mxu1 %v913_v16  ;;  %v803_v16 = vrot.slane %v794_v14, %v1732_v30  ;;  %v1228_v14 = vld [vmem:[#allocation13 + $0x198] sm:$0xff] }
 0x319   :  { %1017 = vmatprep.subr.mxu1 %v912_v17 }
 0x31a   :  { %1018 = vmatpush2.msra.mxu1 %v911_v18 }
 0x39b   :  { %v723_v5 = vpop.f32.mrf.mxu1 }
 0x39c   :  { %v724_v6 = vadd.f32 %v723_v5, %v650_v3  ;;  %v1078_v3 = vld [vmem:[#allocation12 + $0x190] sm:$0xff]  ;;  %v1076_v5 = vld [vmem:[#allocation12 + $0x180] sm:$0xff] }
 0x39d   :  { %v725_v7 = vpop.f32.mrf.mxu1 }
 0x39e   :  { %v726_v8 = vadd.f32 %v725_v7, %v654_v4  ;;  %v728_v10 = vmax.f32 %v724_v6, 0.0  ;;  %v1077_v4 = vld [vmem:[#allocation12 + $0x188] sm:$0xff]  ;;  %v1075_v6 = vld [vmem:[#allocation12 + $0x178] sm:$0xff]  ;;  %v1074_v7 = vld [vmem:[#allocation12 + $0x170] sm:$0xff] }
 0x3a0   :  { %v729_v9 = vmax.f32 %v726_v8, 0.0  ;;  %v1073_v8 = vld [vmem:[#allocation12 + $0x168] sm:$0xff] }
 0x3a2   :  { %870 = vmatprep.mubr.f32.mxu0 %v729_v9  ;;  %v1072_v9 = vld [vmem:[#allocation12 + $0x160] sm:$0xff] }
 0x3a3   :  { %871 = vmatmul.mubr.f32.vlgmr.msra.gmra.mxu0 %v728_v10  ;;  %v1071_v10 = vld [vmem:[#allocation12 + $0x158] sm:$0xff] }
 0x3a4   :  { %1105 = vmatpush1.msra.mxu0 %v1058_v20 }
 0x3a5   :  { %1106 = vmatprep.subr.mxu0 %v1057_v21 }
 0x3a6   :  { %1107 = vmatpush1.msra.mxu0 %v1056_v22 }
 0x3a7   :  { %1108 = vmatprep.subr.mxu0 %v1055_v23  ;;  %v1067_v23 = vld [vmem:[#allocation12 + $0x138] sm:$0xff] }
 0x3a8   :  { %1109 = vmatpush1.msra.mxu0 %v1054_v24  ;;  %v1066_v24 = vld [vmem:[#allocation12 + $0x130] sm:$0xff] }
 0x3a9   :  { %1110 = vmatprep.subr.mxu0 %v1053_v25  ;;  %v1065_v25 = vld [vmem:[#allocation12 + $0x128] sm:$0xff] }
 0x3aa   :  { %1111 = vmatpush1.msra.mxu0 %v1052_v26  ;;  %v1064_v26 = vld [vmem:[#allocation12 + $0x120] sm:$0xff] }
 0x3ab   :  { %1112 = vmatprep.subr.mxu0 %v1051_v29  ;;  %v1063_v29 = vld [vmem:[#allocation12 + $0x118] sm:$0xff] }
 0x3ac   :  { %1113 = vmatpush1.msra.mxu0 %v1050_v31  ;;  %v1062_v31 = vld [vmem:[#allocation12 + $0x110] sm:$0xff] }
 0x3ad   :  { %1114 = vmatprep.subr.mxu0 %v1049_v32  ;;  %v1061_v32 = vld [vmem:[#allocation12 + $0x108] sm:$0xff] }
 0x3ae   :  { %1115 = vmatpush1.msra.mxu0 %v1048_v33  ;;  %v1060_v33 = vld [vmem:[#allocation12 + $0x100] sm:$0xff] }
 0x3af   :  { %1116 = vmatprep.subr.mxu0 %v1047_v34  ;;  %v1208_v34 = vld [vmem:[#allocation13 + $0xf8] sm:$0xff] }
 0x3b0   :  { %1117 = vmatpush1.msra.mxu0 %v1046_v35  ;;  %v1207_v35 = vld [vmem:[#allocation13 + $0xf0] sm:$0xff]  ;;  %1253 = vmatprep.subr.mxu1 %v1208_v34 }
 0x3b1   :  { %1118 = vmatprep.subr.mxu0 %v1045_v36  ;;  %v1206_v36 = vld [vmem:[#allocation13 + $0xe8] sm:$0xff] }
 0x3b2   :  { %1119 = vmatpush1.msra.mxu0 %v1044_v37  ;;  %v1205_v37 = vld [vmem:[#allocation13 + $0xe0] sm:$0xff] }
 0x3b3   :  { %1120 = vmatprep.subr.mxu0 %v1043_v38  ;;  %v1204_v38 = vld [vmem:[#allocation13 + $0xd8] sm:$0xff] }
 0x3b4   :  { %1121 = vmatpush1.msra.mxu0 %v1042_v39  ;;  %v1203_v39 = vld [vmem:[#allocation13 + $0xd0] sm:$0xff] }
 0x3b5   :  { %1122 = vmatprep.subr.mxu0 %v1041_v40  ;;  %v1202_v40 = vld [vmem:[#allocation13 + $0xc8] sm:$0xff] }
 0x3b6   :  { %1123 = vmatpush1.msra.mxu0 %v1040_v41  ;;  %v1201_v41 = vld [vmem:[#allocation13 + $0xc0] sm:$0xff] }
 0x3b7   :  { %1124 = vmatprep.subr.mxu0 %v1039_v42  ;;  %v1200_v42 = vld [vmem:[#allocation13 + $0xb8] sm:$0xff] }
 0x3b8   :  { %1125 = vmatpush1.msra.mxu0 %v1038_v43  ;;  %v1199_v43 = vld [vmem:[#allocation13 + $0xb0] sm:$0xff] }
 0x3b9   :  { %1126 = vmatprep.subr.mxu0 %v1037_v44  ;;  %v1198_v44 = vld [vmem:[#allocation13 + $0xa8] sm:$0xff] }
 0x3ba   :  { %1127 = vmatpush1.msra.mxu0 %v1036_v45  ;;  %v1197_v45 = vld [vmem:[#allocation13 + $0xa0] sm:$0xff] }
 0x3bb   :  { %1128 = vmatprep.subr.mxu0 %v1035_v46  ;;  %v1196_v46 = vld [vmem:[#allocation13 + $0x98] sm:$0xff] }
 0x3bc   :  { %1129 = vmatpush1.msra.mxu0 %v1034_v47  ;;  %v1195_v47 = vld [vmem:[#allocation13 + $0x90] sm:$0xff] }
 0x3bd   :  { %1130 = vmatprep.subr.mxu0 %v1033_v48  ;;  %v1194_v48 = vld [vmem:[#allocation13 + $0x88] sm:$0xff] }
 0x3be   :  { %1131 = vmatpush1.msra.mxu0 %v1032_v49  ;;  %v1193_v49 = vld [vmem:[#allocation13 + $0x80] sm:$0xff] }
 0x3bf   :  { %1132 = vmatprep.subr.mxu0 %v1031_v50  ;;  %v1192_v50 = vld [vmem:[#allocation13 + $0x78] sm:$0xff] }
 0x3c0   :  { %1133 = vmatpush1.msra.mxu0 %v1030_v51  ;;  %v1191_v51 = vld [vmem:[#allocation13 + $0x70] sm:$0xff] }
 0x3c1   :  { %1134 = vmatprep.subr.mxu0 %v1029_v52  ;;  %v1190_v52 = vld [vmem:[#allocation13 + $0x68] sm:$0xff] }
 0x3c2   :  { %1135 = vmatpush1.msra.mxu0 %v1028_v53  ;;  %v1189_v53 = vld [vmem:[#allocation13 + $0x60] sm:$0xff] }
 0x3c3   :  { %1136 = vmatprep.subr.mxu0 %v1091_v54  ;;  %v1188_v54 = vld [vmem:[#allocation13 + $0x58] sm:$0xff] }
 0x3c4   :  { %1137 = vmatpush2.msra.mxu0 %v1090_v55  ;;  %v1187_v55 = vld [vmem:[#allocation13 + $0x50] sm:$0xff] }
 0x3c5   :  { %1138 = vmatprep.subr.mxu0 %v1089_v56  ;;  %v1186_v56 = vld [vmem:[#allocation13 + $0x48] sm:$0xff] }
 0x3c6   :  { %1139 = vmatpush2.msra.mxu0 %v1088_v57  ;;  %v1185_v57 = vld [vmem:[#allocation13 + $0x40] sm:$0xff] }
 0x3c7   :  { %1140 = vmatprep.subr.mxu0 %v1087_v58  ;;  %v1184_v58 = vld [vmem:[#allocation13 + $0x38] sm:$0xff] }
 0x3c8   :  { %1141 = vmatpush2.msra.mxu0 %v1086_v59  ;;  %v1183_v59 = vld [vmem:[#allocation13 + $0x30] sm:$0xff] }
 0x3c9   :  { %1142 = vmatprep.subr.mxu0 %v1085_v60  ;;  %v1182_v60 = vld [vmem:[#allocation13 + $0x28] sm:$0xff] }
 0x3ca   :  { %1143 = vmatpush2.msra.mxu0 %v1084_v61  ;;  %v1181_v61 = vld [vmem:[#allocation13 + $0x20] sm:$0xff] }
 0x3cb   :  { %1144 = vmatprep.subr.mxu0 %v1083_v62  ;;  %v1180_v62 = vld [vmem:[#allocation13 + $0x18] sm:$0xff] }
 0x3cc   :  { %1145 = vmatpush2.msra.mxu0 %v1082_v63  ;;  %v1179_v63 = vld [vmem:[#allocation13 + $0x10] sm:$0xff] }
 0x3cd   :  { %1146 = vmatprep.subr.mxu0 %v1081_v0  ;;  %v1178_v0 = vld [vmem:[#allocation13 + $0x8] sm:$0xff] }
 0x3ce   :  { %1147 = vmatpush2.msra.mxu0 %v1080_v1  ;;  %v1177_v1 = vld [vmem:[#allocation13] sm:$0xff] }
 0x3cf   :  { %1148 = vmatprep.subr.mxu0 %v1079_v2  ;;  %v1240_v2 = vld [vmem:[#allocation13 + $0x1f8] sm:$0xff] }
 0x3d0   :  { %1149 = vmatpush2.msra.mxu0 %v1078_v3  ;;  %v1239_v3 = vld [vmem:[#allocation13 + $0x1f0] sm:$0xff] }
 0x3d1   :  { %1150 = vmatprep.subr.mxu0 %v1077_v4  ;;  %v1238_v4 = vld [vmem:[#allocation13 + $0x1e8] sm:$0xff] }
 0x3d2   :  { %1151 = vmatpush2.msra.mxu0 %v1076_v5  ;;  %v1237_v5 = vld [vmem:[#allocation13 + $0x1e0] sm:$0xff] }
 0x3d3   :  { %1152 = vmatprep.subr.mxu0 %v1075_v6  ;;  %v1236_v6 = vld [vmem:[#allocation13 + $0x1d8] sm:$0xff] }
 0x3d4   :  { %1153 = vmatpush2.msra.mxu0 %v1074_v7  ;;  %v1235_v7 = vld [vmem:[#allocation13 + $0x1d0] sm:$0xff] }
 0x3d5   :  { %1154 = vmatprep.subr.mxu0 %v1073_v8  ;;  %v1234_v8 = vld [vmem:[#allocation13 + $0x1c8] sm:$0xff] }
 0x3d6   :  { %1155 = vmatpush2.msra.mxu0 %v1072_v9  ;;  %v1233_v9 = vld [vmem:[#allocation13 + $0x1c0] sm:$0xff] }
 0x3d7   :  { %1156 = vmatprep.subr.mxu0 %v1071_v10  ;;  %v1232_v10 = vld [vmem:[#allocation13 + $0x1b8] sm:$0xff] }
 0x3d8   :  { %1157 = vmatpush2.msra.mxu0 %v1070_v11  ;;  %v1231_v11 = vld [vmem:[#allocation13 + $0x1b0] sm:$0xff] }
 0x3d9   :  { %1158 = vmatprep.subr.mxu0 %v1069_v12  ;;  %v1230_v12 = vld [vmem:[#allocation13 + $0x1a8] sm:$0xff] }
 0x3da   :  { %1159 = vmatpush2.msra.mxu0 %v1068_v13  ;;  %v1229_v13 = vld [vmem:[#allocation13 + $0x1a0] sm:$0xff] }
 0x3db   :  { %1160 = vmatprep.subr.mxu0 %v1067_v23  ;;  %v1219_v23 = vld [vmem:[#allocation13 + $0x150] sm:$0xff] }
 0x3dc   :  { %1161 = vmatpush2.msra.mxu0 %v1066_v24  ;;  %v1218_v24 = vld [vmem:[#allocation13 + $0x148] sm:$0xff] }
 0x3dd   :  { %1162 = vmatprep.subr.mxu0 %v1065_v25  ;;  %v1217_v25 = vld [vmem:[#allocation13 + $0x140] sm:$0xff] }
 0x3de   :  { %1163 = vmatpush2.msra.mxu0 %v1064_v26  ;;  %v943_v26 = vld [vmem:[%s1790_s12] sm:$0x3] }
 0x3df   :  { %1164 = vmatprep.subr.mxu0 %v1063_v29  ;;  %v948_v29 = vrot.slane %v943_v26, %v1726_v28 }
 0x3e0   :  { %1165 = vmatpush2.msra.mxu0 %v1062_v31  ;;  %v952_v31 = vrot.slane %v943_v26, %v1732_v30 }
 0x3e1   :  { %1166 = vmatprep.subr.mxu0 %v1061_v32 }
 0x3e2   :  { %1167 = vmatpush2.msra.mxu0 %v1060_v33 }
 0x463   :  { %v872_v17 = vpop.f32.mrf.mxu0 }
 0x464   :  { %v873_v18 = vadd.f32 %v872_v17, %v799_v15  ;;  %v1227_v15 = vld [vmem:[#allocation13 + $0x190] sm:$0xff]  ;;  %v1225_v17 = vld [vmem:[#allocation13 + $0x180] sm:$0xff] }
 0x465   :  { %v874_v19 = vpop.f32.mrf.mxu0 }
 0x466   :  { %v875_v20 = vadd.f32 %v874_v19, %v803_v16  ;;  %v877_v22 = vmax.f32 %v873_v18, 0.0  ;;  %v1226_v16 = vld [vmem:[#allocation13 + $0x188] sm:$0xff]  ;;  %v1224_v18 = vld [vmem:[#allocation13 + $0x178] sm:$0xff]  ;;  %v1223_v19 = vld [vmem:[#allocation13 + $0x170] sm:$0xff] }
 0x468   :  { %v878_v21 = vmax.f32 %v875_v20, 0.0  ;;  %v1222_v20 = vld [vmem:[#allocation13 + $0x168] sm:$0xff] }
 0x46a   :  { %1019 = vmatprep.mubr.f32.mxu1 %v878_v21  ;;  %v1221_v21 = vld [vmem:[#allocation13 + $0x160] sm:$0xff] }
 0x46b   :  { %1020 = vmatmul.mubr.f32.vlgmr.msra.gmra.mxu1 %v877_v22  ;;  %v1220_v22 = vld [vmem:[#allocation13 + $0x158] sm:$0xff] }
 0x46c   :  { %1254 = vmatpush1.msra.mxu1 %v1207_v35 }
 0x46d   :  { %1255 = vmatprep.subr.mxu1 %v1206_v36 }
 0x46e   :  { %1256 = vmatpush1.msra.mxu1 %v1205_v37 }
 0x46f   :  { %1257 = vmatprep.subr.mxu1 %v1204_v38  ;;  %v1216_v38 = vld [vmem:[#allocation13 + $0x138] sm:$0xff] }
 0x470   :  { %1258 = vmatpush1.msra.mxu1 %v1203_v39  ;;  %v1215_v39 = vld [vmem:[#allocation13 + $0x130] sm:$0xff] }
 0x471   :  { %1259 = vmatprep.subr.mxu1 %v1202_v40  ;;  %v1214_v40 = vld [vmem:[#allocation13 + $0x128] sm:$0xff] }
 0x472   :  { %1260 = vmatpush1.msra.mxu1 %v1201_v41  ;;  %v1213_v41 = vld [vmem:[#allocation13 + $0x120] sm:$0xff] }
 0x473   :  { %1261 = vmatprep.subr.mxu1 %v1200_v42  ;;  %v1212_v42 = vld [vmem:[#allocation13 + $0x118] sm:$0xff] }
 0x474   :  { %1262 = vmatpush1.msra.mxu1 %v1199_v43  ;;  %v1211_v43 = vld [vmem:[#allocation13 + $0x110] sm:$0xff] }
 0x475   :  { %1263 = vmatprep.subr.mxu1 %v1198_v44  ;;  %v1210_v44 = vld [vmem:[#allocation13 + $0x108] sm:$0xff] }
 0x476   :  { %1264 = vmatpush1.msra.mxu1 %v1197_v45  ;;  %v1209_v45 = vld [vmem:[#allocation13 + $0x100] sm:$0xff] }
 0x477   :  { %1265 = vmatprep.subr.mxu1 %v1196_v46  ;;  %v1092_v46 = vld [vmem:[%s1792_s14] sm:$0x3] }
 0x478   :  { %1266 = vmatpush1.msra.mxu1 %v1195_v47  ;;  %v1097_v47 = vrot.slane %v1092_v46, %v1726_v28 }
 0x479   :  { %1267 = vmatprep.subr.mxu1 %v1194_v48  ;;  %v1101_v48 = vrot.slane %v1092_v46, %v1732_v30 }
 0x47a   :  { %1268 = vmatpush1.msra.mxu1 %v1193_v49 }
 0x47b   :  { %1269 = vmatprep.subr.mxu1 %v1192_v50 }
 0x47c   :  { %1270 = vmatpush1.msra.mxu1 %v1191_v51 }
 0x47d   :  { %1271 = vmatprep.subr.mxu1 %v1190_v52 }
 0x47e   :  { %1272 = vmatpush1.msra.mxu1 %v1189_v53 }
 0x47f   :  { %1273 = vmatprep.subr.mxu1 %v1188_v54 }
 0x480   :  { %1274 = vmatpush1.msra.mxu1 %v1187_v55  ;;  %v1241_v55 = vld [vmem:[%s1794_s16] sm:$0x3] }
 0x481   :  { %1275 = vmatprep.subr.mxu1 %v1186_v56  ;;  %v1246_v56 = vrot.slane %v1241_v55, %v1726_v28 }
 0x482   :  { %1276 = vmatpush1.msra.mxu1 %v1185_v57  ;;  %v1250_v57 = vrot.slane %v1241_v55, %v1732_v30 }
 0x483   :  { %1277 = vmatprep.subr.mxu1 %v1184_v58 }
 0x484   :  { %1278 = vmatpush1.msra.mxu1 %v1183_v59 }
 0x485   :  { %1279 = vmatprep.subr.mxu1 %v1182_v60 }
 0x486   :  { %1280 = vmatpush1.msra.mxu1 %v1181_v61 }
 0x487   :  { %1281 = vmatprep.subr.mxu1 %v1180_v62 }
 0x488   :  { %1282 = vmatpush1.msra.mxu1 %v1179_v63 }
 0x489   :  { %1283 = vmatprep.subr.mxu1 %v1178_v0 }
 0x48a   :  { %1284 = vmatpush1.msra.mxu1 %v1177_v1 }
 0x48b   :  { %1285 = vmatprep.subr.mxu1 %v1240_v2 }
 0x48c   :  { %1286 = vmatpush2.msra.mxu1 %v1239_v3 }
 0x48d   :  { %1287 = vmatprep.subr.mxu1 %v1238_v4 }
 0x48e   :  { %1288 = vmatpush2.msra.mxu1 %v1237_v5 }
 0x48f   :  { %1289 = vmatprep.subr.mxu1 %v1236_v6 }
 0x490   :  { %1290 = vmatpush2.msra.mxu1 %v1235_v7 }
 0x491   :  { %1291 = vmatprep.subr.mxu1 %v1234_v8 }
 0x492   :  { %1292 = vmatpush2.msra.mxu1 %v1233_v9 }
 0x493   :  { %1293 = vmatprep.subr.mxu1 %v1232_v10 }
 0x494   :  { %1294 = vmatpush2.msra.mxu1 %v1231_v11 }
 0x495   :  { %1295 = vmatprep.subr.mxu1 %v1230_v12 }
 0x496   :  { %1296 = vmatpush2.msra.mxu1 %v1229_v13 }
 0x497   :  { %1297 = vmatprep.subr.mxu1 %v1228_v14 }
 0x498   :  { %1298 = vmatpush2.msra.mxu1 %v1227_v15 }
 0x499   :  { %1299 = vmatprep.subr.mxu1 %v1226_v16 }
 0x49a   :  { %1300 = vmatpush2.msra.mxu1 %v1225_v17 }
 0x49b   :  { %1301 = vmatprep.subr.mxu1 %v1224_v18 }
 0x49c   :  { %1302 = vmatpush2.msra.mxu1 %v1223_v19 }
 0x49d   :  { %1303 = vmatprep.subr.mxu1 %v1222_v20 }
 0x49e   :  { %1304 = vmatpush2.msra.mxu1 %v1221_v21 }
 0x49f   :  { %1305 = vmatprep.subr.mxu1 %v1220_v22 }
 0x4a0   :  { %1306 = vmatpush2.msra.mxu1 %v1219_v23 }
 0x4a1   :  { %1307 = vmatprep.subr.mxu1 %v1218_v24 }
 0x4a2   :  { %1308 = vmatpush2.msra.mxu1 %v1217_v25 }
 0x4a3   :  { %1309 = vmatprep.subr.mxu1 %v1216_v38 }
 0x4a4   :  { %1310 = vmatpush2.msra.mxu1 %v1215_v39 }
 0x4a5   :  { %1311 = vmatprep.subr.mxu1 %v1214_v40 }
 0x4a6   :  { %1312 = vmatpush2.msra.mxu1 %v1213_v41 }
 0x4a7   :  { %1313 = vmatprep.subr.mxu1 %v1212_v42 }
 0x4a8   :  { %1314 = vmatpush2.msra.mxu1 %v1211_v43 }
 0x4a9   :  { %1315 = vmatprep.subr.mxu1 %v1210_v44 }
 0x4aa   :  { %1316 = vmatpush2.msra.mxu1 %v1209_v45 }
 0x52b   :  { %v1021_v32 = vpop.f32.mrf.mxu1 }
 0x52c   :  { %v1022_v33 = vadd.f32 %v1021_v32, %v948_v29 }
 0x52d   :  { %v1023_v34 = vpop.f32.mrf.mxu1 }
 0x52e   :  { %v1024_v35 = vadd.f32 %v1023_v34, %v952_v31  ;;  %v1026_v37 = vmax.f32 %v1022_v33, 0.0 }
 0x530   :  { %v1027_v36 = vmax.f32 %v1024_v35, 0.0 }
 0x532   :  { %1168 = vmatprep.mubr.f32.mxu0 %v1027_v36 }
 0x533   :  { %1169 = vmatmul.mubr.f32.vlgmr.msra.gmra.mxu0 %v1026_v37 }
 0x5f3   :  { %v1170_v49 = vpop.f32.mrf.mxu0 }
 0x5f4   :  { %v1171_v50 = vadd.f32 %v1170_v49, %v1097_v47 }
 0x5f5   :  { %v1172_v51 = vpop.f32.mrf.mxu0 }
 0x5f6   :  { %v1173_v52 = vadd.f32 %v1172_v51, %v1101_v48  ;;  %v1175_v54 = vmax.f32 %v1171_v50, 0.0 }
 0x5f8   :  { %v1176_v53 = vmax.f32 %v1173_v52, 0.0 }
 0x5fa   :  { %1317 = vmatprep.mubr.f32.mxu1 %v1176_v53 }
 0x5fb   :  { %1318 = vmatmul.mubr.f32.vlgmr.msra.gmra.mxu1 %v1175_v54 }
 0x6bb   :  { %v1319_v58 = vpop.f32.mrf.mxu1 }
 0x6bc   :  { %v1320_v59 = vadd.f32 %v1319_v58, %v1246_v56 }
 0x6bd   :  { %v1321_v60 = vpop.f32.mrf.mxu1 }
 0x6be   :  { %v1324_v61 = vmax.f32 %v1320_v59, 0.0  ;;  %v1322_v62 = vadd.f32 %v1321_v60, %v1250_v57 }
 0x6c0   :  { %v1325_v63 = vmax.f32 %v1322_v62, 0.0  ;;  %v1336_v0 = vsel %vm1331_vm0, %v1324_v61, inf  ;;  %v1348_v4 = vsel %vm1331_vm0, %v1324_v61, -inf }
 0x6c2   :  { %v1337_v1 = vsel %vm1331_vm0, %v1325_v63, inf  ;;  %v1349_v3 = vsel %vm1331_vm0, %v1325_v63, -inf }
 0x6c3   :  { %v1338_v2 = vmin.f32 %v1336_v0, %v1337_v1  ;;  %v1350_v5 = vmax.f32 %v1348_v4, %v1349_v3 }
 0x6c5   :  { %1339 = vmin.xlane.f32.xlu0 %v1338_v2 }
 0x6c9   :  { %1351 = vmax.xlane.f32.xlu0 %v1350_v5 }
 0x74e   :  { %v1340_v6 = vpop.xlane.xlu0 %1339 }
 0x74f   :  { %v1341_v28 = vrot.slane %v1340_v6, 4 }
 0x751   :  { %v1342_v7 = vmin.f32 %v1340_v6, %v1341_v28 }
 0x752   :  { %v1352_v30 = vpop.xlane.xlu0 %1351 }
 0x753   :  { %v1343_v8 = vrot.slane %v1342_v7, 2  ;;  %v1353_v9 = vrot.slane %v1352_v30, 4 }
 0x755   :  { %v1354_v10 = vmax.f32 %v1352_v30, %v1353_v9  ;;  %v1344_v11 = vmin.f32 %v1342_v7, %v1343_v8 }
 0x757   :  { %v1355_v12 = vrot.slane %v1354_v10, 2  ;;  %v1345_v13 = vrot.slane %v1344_v11, 1 }
 0x759   :  { %v1356_v27 = vmax.f32 %v1354_v10, %v1355_v12  ;;  %v1346_v14 = vmin.f32 %v1344_v11, %v1345_v13 }
 0x75b   :  { %1382 = vpush %v1346_v14  ;;  %v1357_v15 = vrot.slane %v1356_v27, 1 }
 0x75d   :  { %v1358_v16 = vmax.f32 %v1356_v27, %v1357_v15 }
 0x75f   :  { %1384 = vpush %v1358_v16 }
 0x78c   :  { %s1383_s14 = spop %1382 }
 0x78d   :  { %v1365_v19 = vstv %s1383_s14 }
 0x78e   :  { %v1366_v20 = vsub.f32 %v1324_v61, %v1365_v19  ;;  %v1367_v21 = vsub.f32 %v1325_v63, %v1365_v19 }
 0x790   :  { %s1385_s16 = spop %1384 }
 0x791   :  { %s1360_s26 = ssub.f32 %s1385_s16, %s1383_s14 }
 0x793   :  { %v1361_v17 = vstv %s1360_s26 }
 0x794   :  { %1399 = vrcp.f32 %v1361_v17 }
 0x7a1   :  { %v1400_v18 = vpop.eup %1399 }
 0x7a2   :  { %1386 = vpush %v1400_v18 }
 0x7d3   :  { %s1387_s7 = spop %1386 }
 0x7d4   :  { %s1364_s27 = smul.f32 255.0, %s1387_s7 }
 0x7d6   :  { %v1368_v22 = vstv %s1364_s27 }
 0x7d7   :  { %v1369_v23 = vmul.f32 %v1368_v22, %v1366_v20  ;;  %v1370_v24 = vmul.f32 %v1368_v22, %v1367_v21 }
 0x7d9   :  { %1371 = vst [vmem:[%s1795_s17] sm:$0xff] %v1369_v23  ;;  %1372 = vst [vmem:[%s1795_s17 + $0x8] sm:$0xff] %v1370_v24 }
 0x7da   :  { %1377 = vsyncpa [#allocation3], 1 }
 0x7db   :  { %1378 = vsyncpa [#allocation5], 1 }
 0x7dc   :  { %1379 = vsyncpa [#allocation8], 1 }
 0x7dd   :  { %1380 = vsyncpa [#allocation11], 1 }
 0x7de   :  { %1381 = vsyncpa [#allocation14], 1 }

</bundles_post_ra>
